<compile_context>
chip_gen: v7x
topology: tpu7x:2x2x1
jax: 0.10.0
libtpu: 0.0.40
codegen_flags: <defaults>
</compile_context>

<pallas_src>
import numpy as np
import jax
import jax.numpy as jnp
from jax.experimental import pallas as pl
from jax.experimental.pallas import tpu as pltpu

# ----- hyper-parameters implied by model_base.__init__ -----
APP_EMB_DIM = 16          # self.app_emb_dim
SESSION_EMB_DIM = 32      # self.session_emb_dim
EMB_TIME_DIM = 16         # config['model']['timeemb']
EMB_LOC_DIM = 32          # self.emb_loc_dim
ST_DIM = EMB_TIME_DIM + EMB_LOC_DIM                      # 48
STEP_EMB_DIM = 16         # diffusion-step embedding for the stand-in denoiser
SIDE_DIM = SESSION_EMB_DIM + ST_DIM + STEP_EMB_DIM       # 96 broadcast channels
C_IN = 1 + SIDE_DIM                                      # 97 (noisy + side info)
HIDDEN = 64
NUM_STEPS = 8
BETA_START, BETA_END = 1e-4, 0.02                        # 'linear' schedule

B, L = 2, 8
E = APP_EMB_DIM
LE = L * E                # 128 -> lane dimension
N_APP, N_LOC, N_SESS = 50, 30, 20


# ---------------- fused Pallas kernel ----------------

def fused_loss_kernel(app_ref, noise_ref, side_ref, sqa_ref, sq1ma_ref,
                      inv_sqa_ref, lam_ref, w1s_ref, b1_ref,
                      w1n_sm, w2_sm, b2_sm, out_ref):
    app = app_ref[...]            # (B, LE)  lane-dense (LE = L*E = 128 lanes)
    noise = noise_ref[...]        # (B, LE)
    sqa = sqa_ref[...]            # (B, 1)
    sq1ma = sq1ma_ref[...]        # (B, 1)

    # ---- forward noising (previously its own pallas_call) ----
    noisy = sqa * app + sq1ma * noise                                   # (B, LE)

    # ---- stand-in denoiser: side channels are constant per sample, so their
    # first-layer contribution is one (B,96)@(96,H) matmul; the 'noisy' channel
    # enters as a rank-1 term with scalar weights read from SMEM.
    side_h = jnp.dot(side_ref[...], w1s_ref[...],
                     preferred_element_type=jnp.float32) + b1_ref[...]  # (B, H)

    acc = jnp.zeros_like(noisy)                                         # (B, LE)
    for k in range(w1n_sm.shape[0]):            # static unroll over HIDDEN = 64
        hk = jnp.maximum(noisy * w1n_sm[k] + side_h[:, k:k + 1], 0.0)   # (B, LE)
        acc = acc + w2_sm[k] * hk
    pred = acc + b2_sm[0]                                               # (B, LE)

    # ---- diffusion loss: loss_1 + mean(lambda_t * loss_2) ----
    d1 = noise - pred
    loss1 = jnp.sum(d1 * d1) * (1.0 / d1.size)            # MSE over all elements

    # predict_app_emb = (noisy - sqrt(1-a)*pred) * rsqrt(a)   (reciprocal hoisted)
    pred_app = (noisy - sq1ma * pred) * inv_sqa_ref[...]
    d2 = pred_app - app
    loss2 = jnp.sum(d2 * d2, axis=-1, keepdims=True) * (1.0 / d2.shape[-1])  # (B,1)
    total = loss1 + jnp.sum(lam_ref[...] * loss2) * (1.0 / loss2.shape[0])
    out_ref[...] = jnp.broadcast_to(total, (1, 1))


# ---------------- pallas_call wrapper ----------------

def _full_spec(shape):
    n = len(shape)
    return pl.BlockSpec(shape, lambda i, _n=n: (0,) * _n)


def fused_diffusion_loss(app2d, noise2d, side, sqa, sq1ma, inv_sqa, lam,
                         w1_side, b1, w1_noisy, w2, b2):
    Bn, LEn = app2d.shape
    H = w1_side.shape[1]
    flops = (3 * Bn * LEn                        # noising
             + 2 * Bn * side.shape[1] * H        # side-info matmul
             + 5 * Bn * LEn * H                  # per-hidden rank-1 MLP
             + 10 * Bn * LEn)                    # loss
    vmem_inputs = (app2d, noise2d, side, sqa, sq1ma, inv_sqa, lam, w1_side, b1)
    smem_inputs = (w1_noisy, w2, b2)
    bytes_accessed = 4 * sum(int(np.prod(a.shape))
                             for a in vmem_inputs + smem_inputs) + 4
    smem_spec = pl.BlockSpec(memory_space=pltpu.MemorySpace.SMEM)

    out = pl.pallas_call(
        fused_loss_kernel,
        out_shape=jax.ShapeDtypeStruct((1, 1), jnp.float32),
        grid=(1,),                                   # whole problem in one step
        in_specs=[_full_spec(a.shape) for a in vmem_inputs] + [smem_spec] * 3,
        out_specs=_full_spec((1, 1)),
        compiler_params=pltpu.CompilerParams(
            dimension_semantics=("arbitrary",)),     # tiny: keep on a single core
        cost_estimate=pl.CostEstimate(flops=int(flops), transcendentals=0,
                                      bytes_accessed=int(bytes_accessed)),
    )(app2d, noise2d, side, sqa, sq1ma, inv_sqa, lam, w1_side, b1,
      w1_noisy, w2, b2)
    return out[0, 0]


# ---------------- JAX glue (embedding gathers, schedule, RNG) ----------------

def time_embedding(pos, d_model):
    # matches model_base.time_embedding (interleaved sin/cos)
    position = pos.astype(jnp.float32)[:, None]
    div_term = 1.0 / jnp.power(
        10000.0, jnp.arange(0, d_model, 2).astype(jnp.float32) / d_model)
    pe_sin = jnp.sin(position * div_term)
    pe_cos = jnp.cos(position * div_term)
    return jnp.stack([pe_sin, pe_cos], axis=-1).reshape(pos.shape[0], d_model)


def calc_loss(params, tp, loc, app_seq, session_id, key):
    (app_emb_dict, session_emb_dict, loc_emb_dict,
     w1, b1, w2, b2, alpha_hat) = params

    app_emb = app_emb_dict[app_seq].astype(jnp.float32)        # (B, L, E)
    Bn, Ln, En = app_emb.shape

    key_t, key_n = jax.random.split(key)
    t = jax.random.randint(key_t, (Bn,), 0, NUM_STEPS)         # is_train == 1 path
    current_alpha = alpha_hat[t]                               # (B,)
    sqa = jnp.sqrt(current_alpha)
    sq1ma = jnp.sqrt(1.0 - current_alpha)
    inv_sqa = jax.lax.rsqrt(current_alpha)                     # hoisted reciprocal
    lam = 1.0 - 0.1 * t.astype(jnp.float32) / NUM_STEPS
    noise = jax.random.normal(key_n, app_emb.shape, dtype=jnp.float32)

    app2d = app_emb.reshape(Bn, Ln * En)                       # lane-dense (B, L*E)
    noise2d = noise.reshape(Bn, Ln * En)

    # side information (constant over (L, E) per sample): session + ST + step
    time_emb = time_embedding(tp, EMB_TIME_DIM)                # (B, 16)
    loc_emb = loc_emb_dict[loc - 1]                            # (B, 32) loc_embedding
    sess_emb = session_emb_dict[session_id - 1]                # (B, 32) session_embedding
    step_emb = time_embedding(t.astype(jnp.float32), STEP_EMB_DIM)  # (B, 16)
    # channel order matches w1 rows 1:97: [session | ST(time,loc) | step]
    side = jnp.concatenate([sess_emb, time_emb, loc_emb, step_emb], axis=-1)  # (B, 96)

    w1_noisy = w1[0, :]                                        # (H,)  'noisy' channel row
    w1_side = w1[1:, :]                                        # (96, H)

    return fused_diffusion_loss(
        app2d, noise2d, side,
        sqa.reshape(Bn, 1), sq1ma.reshape(Bn, 1), inv_sqa.reshape(Bn, 1),
        lam.reshape(Bn, 1),
        w1_side, b1, w1_noisy, w2, b2)


if __name__ == "__main__":
    key = jax.random.PRNGKey(0)
    ks = jax.random.split(key, 12)

    # deterministic "embedding tables" and stand-in denoiser weights
    app_emb_dict = 0.1 * jax.random.normal(ks[0], (N_APP, APP_EMB_DIM), dtype=jnp.float32)
    session_emb_dict = 0.1 * jax.random.normal(ks[1], (N_SESS, SESSION_EMB_DIM), dtype=jnp.float32)
    loc_emb_dict = 0.1 * jax.random.normal(ks[2], (N_LOC, EMB_LOC_DIM), dtype=jnp.float32)
    w1 = 0.05 * jax.random.normal(ks[3], (C_IN, HIDDEN), dtype=jnp.float32)   # (97, 64)
    b1 = jnp.zeros((1, HIDDEN), jnp.float32)
    w2 = 0.05 * jax.random.normal(ks[4], (HIDDEN,), dtype=jnp.float32)
    b2 = jnp.zeros((1,), jnp.float32)

    # diffusion schedule ('linear')
    beta = np.linspace(BETA_START, BETA_END, NUM_STEPS)
    alpha_hat = jnp.asarray(np.cumprod(1.0 - beta), dtype=jnp.float32)

    # batch = (tp, loc, app_seq, session_id) -- what process_data would return
    tp = 100.0 * jax.random.uniform(ks[5], (B,), dtype=jnp.float32)
    loc = jax.random.randint(ks[6], (B,), 1, N_LOC + 1)
    app_seq = jax.random.randint(ks[7], (B, L), 0, N_APP)
    session_id = jax.random.randint(ks[8], (B,), 1, N_SESS + 1)

    params = (app_emb_dict, session_emb_dict, loc_emb_dict, w1, b1, w2, b2, alpha_hat)
    loss = jax.jit(calc_loss)(params, tp, loc, app_seq, session_id, ks[9])
    loss = jax.block_until_ready(loss)
    assert bool(jnp.isfinite(loss))
    print("KERNEL_OK")
</pallas_src>

<mosaic_0001>
module attributes {stable_mosaic.version = 11 : i64} {
  func.func @fused_loss_kernel(%arg0: i32, %arg1: memref<2x128xf32, #tpu.memory_space<vmem>>, %arg2: memref<2x128xf32, #tpu.memory_space<vmem>>, %arg3: memref<2x96xf32, #tpu.memory_space<vmem>>, %arg4: memref<2x1xf32, #tpu.memory_space<vmem>>, %arg5: memref<2x1xf32, #tpu.memory_space<vmem>>, %arg6: memref<2x1xf32, #tpu.memory_space<vmem>>, %arg7: memref<2x1xf32, #tpu.memory_space<vmem>>, %arg8: memref<96x64xf32, #tpu.memory_space<vmem>>, %arg9: memref<1x64xf32, #tpu.memory_space<vmem>>, %arg10: memref<64xf32, #tpu.memory_space<smem>>, %arg11: memref<64xf32, #tpu.memory_space<smem>>, %arg12: memref<1xf32, #tpu.memory_space<smem>>, %arg13: memref<1x1xf32, #tpu.memory_space<vmem>>) attributes {dimension_semantics = [#tpu.dimension_semantics<arbitrary>], iteration_bounds = array<i64: 1>, scalar_prefetch = 0 : i64, scratch_operands = 0 : i64, tpu.core_type = #tpu.core_type<tc>, window_params = [{pipeline_mode = #tpu.pipeline_mode<synchronous>, transform_indices = @transform_0, window_bounds = array<i64: 2, 128>}, {pipeline_mode = #tpu.pipeline_mode<synchronous>, transform_indices = @transform_1, window_bounds = array<i64: 2, 128>}, {pipeline_mode = #tpu.pipeline_mode<synchronous>, transform_indices = @transform_2, window_bounds = array<i64: 2, 96>}, {pipeline_mode = #tpu.pipeline_mode<synchronous>, transform_indices = @transform_3, window_bounds = array<i64: 2, 1>}, {pipeline_mode = #tpu.pipeline_mode<synchronous>, transform_indices = @transform_4, window_bounds = array<i64: 2, 1>}, {pipeline_mode = #tpu.pipeline_mode<synchronous>, transform_indices = @transform_5, window_bounds = array<i64: 2, 1>}, {pipeline_mode = #tpu.pipeline_mode<synchronous>, transform_indices = @transform_6, window_bounds = array<i64: 2, 1>}, {pipeline_mode = #tpu.pipeline_mode<synchronous>, transform_indices = @transform_7, window_bounds = array<i64: 96, 64>}, {pipeline_mode = #tpu.pipeline_mode<synchronous>, transform_indices = @transform_8, window_bounds = array<i64: 1, 64>}, {transform_indices = @transform_9, window_bounds = array<i64: 64>}, {transform_indices = @transform_10, window_bounds = array<i64: 64>}, {transform_indices = @transform_11, window_bounds = array<i64: 1>}, {pipeline_mode = #tpu.pipeline_mode<synchronous>, transform_indices = @transform_12, window_bounds = array<i64: 1, 1>}]} {
    %c0 = arith.constant 0 : index
    %c0_0 = arith.constant 0 : index
    %0 = vector.load %arg1[%c0, %c0_0] : memref<2x128xf32, #tpu.memory_space<vmem>>, vector<2x128xf32>
    %c0_1 = arith.constant 0 : index
    %c0_2 = arith.constant 0 : index
    %1 = vector.load %arg2[%c0_1, %c0_2] : memref<2x128xf32, #tpu.memory_space<vmem>>, vector<2x128xf32>
    %c0_3 = arith.constant 0 : index
    %c0_4 = arith.constant 0 : index
    %2 = vector.load %arg4[%c0_3, %c0_4] : memref<2x1xf32, #tpu.memory_space<vmem>>, vector<2x1xf32>
    %c0_5 = arith.constant 0 : index
    %c0_6 = arith.constant 0 : index
    %3 = vector.load %arg5[%c0_5, %c0_6] : memref<2x1xf32, #tpu.memory_space<vmem>>, vector<2x1xf32>
    %4 = vector.broadcast %2 : vector<2x1xf32> to vector<2x128xf32>
    %5 = arith.mulf %4, %0 : vector<2x128xf32>
    %6 = vector.broadcast %3 : vector<2x1xf32> to vector<2x128xf32>
    %7 = arith.mulf %6, %1 : vector<2x128xf32>
    %8 = arith.addf %5, %7 : vector<2x128xf32>
    %c0_7 = arith.constant 0 : index
    %c0_8 = arith.constant 0 : index
    %9 = vector.load %arg3[%c0_7, %c0_8] : memref<2x96xf32, #tpu.memory_space<vmem>>, vector<2x96xf32>
    %c0_9 = arith.constant 0 : index
    %c0_10 = arith.constant 0 : index
    %10 = vector.load %arg8[%c0_9, %c0_10] : memref<96x64xf32, #tpu.memory_space<vmem>>, vector<96x64xf32>
    %cst = arith.constant dense<0.000000e+00> : vector<2x64xf32>
    %11 = tpu.matmul %9, %10, %cst {dimension_numbers = #tpu.dot_dimension_numbers<[1], [0], [0], [1], [0, 0, 1, 1], [], []>} : vector<2x96xf32>, vector<96x64xf32>, vector<2x64xf32> -> vector<2x64xf32>
    %c0_11 = arith.constant 0 : index
    %c0_12 = arith.constant 0 : index
    %12 = vector.load %arg9[%c0_11, %c0_12] : memref<1x64xf32, #tpu.memory_space<vmem>>, vector<1x64xf32>
    %13 = vector.broadcast %12 : vector<1x64xf32> to vector<2x64xf32>
    %14 = arith.addf %11, %13 : vector<2x64xf32>
    %cst_13 = arith.constant 0.000000e+00 : f32
    %15 = vector.broadcast %cst_13 : f32 to vector<2x128xf32>
    %c0_14 = arith.constant 0 : index
    %16 = memref.load %arg10[%c0_14] : memref<64xf32, #tpu.memory_space<smem>>
    %17 = vector.broadcast %16 : f32 to vector<2x128xf32>
    %18 = arith.mulf %8, %17 : vector<2x128xf32>
    %19 = vector.extract_strided_slice %14 {offsets = [0, 0], sizes = [2, 1], strides = [1, 1]} : vector<2x64xf32> to vector<2x1xf32>
    %20 = vector.broadcast %19 : vector<2x1xf32> to vector<2x128xf32>
    %21 = arith.addf %18, %20 : vector<2x128xf32>
    %cst_15 = arith.constant 0.000000e+00 : f32
    %22 = vector.broadcast %cst_15 : f32 to vector<2x128xf32>
    %23 = arith.maximumf %21, %22 : vector<2x128xf32>
    %c0_16 = arith.constant 0 : index
    %24 = memref.load %arg11[%c0_16] : memref<64xf32, #tpu.memory_space<smem>>
    %25 = vector.broadcast %24 : f32 to vector<2x128xf32>
    %26 = arith.mulf %25, %23 : vector<2x128xf32>
    %27 = arith.addf %15, %26 : vector<2x128xf32>
    %c1 = arith.constant 1 : index
    %28 = memref.load %arg10[%c1] : memref<64xf32, #tpu.memory_space<smem>>
    %29 = vector.broadcast %28 : f32 to vector<2x128xf32>
    %30 = arith.mulf %8, %29 : vector<2x128xf32>
    %31 = vector.extract_strided_slice %14 {offsets = [0, 1], sizes = [2, 1], strides = [1, 1]} : vector<2x64xf32> to vector<2x1xf32>
    %32 = vector.broadcast %31 : vector<2x1xf32> to vector<2x128xf32>
    %33 = arith.addf %30, %32 : vector<2x128xf32>
    %cst_17 = arith.constant 0.000000e+00 : f32
    %34 = vector.broadcast %cst_17 : f32 to vector<2x128xf32>
    %35 = arith.maximumf %33, %34 : vector<2x128xf32>
    %c1_18 = arith.constant 1 : index
    %36 = memref.load %arg11[%c1_18] : memref<64xf32, #tpu.memory_space<smem>>
    %37 = vector.broadcast %36 : f32 to vector<2x128xf32>
    %38 = arith.mulf %37, %35 : vector<2x128xf32>
    %39 = arith.addf %27, %38 : vector<2x128xf32>
    %c2 = arith.constant 2 : index
    %40 = memref.load %arg10[%c2] : memref<64xf32, #tpu.memory_space<smem>>
    %41 = vector.broadcast %40 : f32 to vector<2x128xf32>
    %42 = arith.mulf %8, %41 : vector<2x128xf32>
    %43 = vector.extract_strided_slice %14 {offsets = [0, 2], sizes = [2, 1], strides = [1, 1]} : vector<2x64xf32> to vector<2x1xf32>
    %44 = vector.broadcast %43 : vector<2x1xf32> to vector<2x128xf32>
    %45 = arith.addf %42, %44 : vector<2x128xf32>
    %cst_19 = arith.constant 0.000000e+00 : f32
    %46 = vector.broadcast %cst_19 : f32 to vector<2x128xf32>
    %47 = arith.maximumf %45, %46 : vector<2x128xf32>
    %c2_20 = arith.constant 2 : index
    %48 = memref.load %arg11[%c2_20] : memref<64xf32, #tpu.memory_space<smem>>
    %49 = vector.broadcast %48 : f32 to vector<2x128xf32>
    %50 = arith.mulf %49, %47 : vector<2x128xf32>
    %51 = arith.addf %39, %50 : vector<2x128xf32>
    %c3 = arith.constant 3 : index
    %52 = memref.load %arg10[%c3] : memref<64xf32, #tpu.memory_space<smem>>
    %53 = vector.broadcast %52 : f32 to vector<2x128xf32>
    %54 = arith.mulf %8, %53 : vector<2x128xf32>
    %55 = vector.extract_strided_slice %14 {offsets = [0, 3], sizes = [2, 1], strides = [1, 1]} : vector<2x64xf32> to vector<2x1xf32>
    %56 = vector.broadcast %55 : vector<2x1xf32> to vector<2x128xf32>
    %57 = arith.addf %54, %56 : vector<2x128xf32>
    %cst_21 = arith.constant 0.000000e+00 : f32
    %58 = vector.broadcast %cst_21 : f32 to vector<2x128xf32>
    %59 = arith.maximumf %57, %58 : vector<2x128xf32>
    %c3_22 = arith.constant 3 : index
    %60 = memref.load %arg11[%c3_22] : memref<64xf32, #tpu.memory_space<smem>>
    %61 = vector.broadcast %60 : f32 to vector<2x128xf32>
    %62 = arith.mulf %61, %59 : vector<2x128xf32>
    %63 = arith.addf %51, %62 : vector<2x128xf32>
    %c4 = arith.constant 4 : index
    %64 = memref.load %arg10[%c4] : memref<64xf32, #tpu.memory_space<smem>>
    %65 = vector.broadcast %64 : f32 to vector<2x128xf32>
    %66 = arith.mulf %8, %65 : vector<2x128xf32>
    %67 = vector.extract_strided_slice %14 {offsets = [0, 4], sizes = [2, 1], strides = [1, 1]} : vector<2x64xf32> to vector<2x1xf32>
    %68 = vector.broadcast %67 : vector<2x1xf32> to vector<2x128xf32>
    %69 = arith.addf %66, %68 : vector<2x128xf32>
    %cst_23 = arith.constant 0.000000e+00 : f32
    %70 = vector.broadcast %cst_23 : f32 to vector<2x128xf32>
    %71 = arith.maximumf %69, %70 : vector<2x128xf32>
    %c4_24 = arith.constant 4 : index
    %72 = memref.load %arg11[%c4_24] : memref<64xf32, #tpu.memory_space<smem>>
    %73 = vector.broadcast %72 : f32 to vector<2x128xf32>
    %74 = arith.mulf %73, %71 : vector<2x128xf32>
    %75 = arith.addf %63, %74 : vector<2x128xf32>
    %c5 = arith.constant 5 : index
    %76 = memref.load %arg10[%c5] : memref<64xf32, #tpu.memory_space<smem>>
    %77 = vector.broadcast %76 : f32 to vector<2x128xf32>
    %78 = arith.mulf %8, %77 : vector<2x128xf32>
    %79 = vector.extract_strided_slice %14 {offsets = [0, 5], sizes = [2, 1], strides = [1, 1]} : vector<2x64xf32> to vector<2x1xf32>
    %80 = vector.broadcast %79 : vector<2x1xf32> to vector<2x128xf32>
    %81 = arith.addf %78, %80 : vector<2x128xf32>
    %cst_25 = arith.constant 0.000000e+00 : f32
    %82 = vector.broadcast %cst_25 : f32 to vector<2x128xf32>
    %83 = arith.maximumf %81, %82 : vector<2x128xf32>
    %c5_26 = arith.constant 5 : index
    %84 = memref.load %arg11[%c5_26] : memref<64xf32, #tpu.memory_space<smem>>
    %85 = vector.broadcast %84 : f32 to vector<2x128xf32>
    %86 = arith.mulf %85, %83 : vector<2x128xf32>
    %87 = arith.addf %75, %86 : vector<2x128xf32>
    %c6 = arith.constant 6 : index
    %88 = memref.load %arg10[%c6] : memref<64xf32, #tpu.memory_space<smem>>
    %89 = vector.broadcast %88 : f32 to vector<2x128xf32>
    %90 = arith.mulf %8, %89 : vector<2x128xf32>
    %91 = vector.extract_strided_slice %14 {offsets = [0, 6], sizes = [2, 1], strides = [1, 1]} : vector<2x64xf32> to vector<2x1xf32>
    %92 = vector.broadcast %91 : vector<2x1xf32> to vector<2x128xf32>
    %93 = arith.addf %90, %92 : vector<2x128xf32>
    %cst_27 = arith.constant 0.000000e+00 : f32
    %94 = vector.broadcast %cst_27 : f32 to vector<2x128xf32>
    %95 = arith.maximumf %93, %94 : vector<2x128xf32>
    %c6_28 = arith.constant 6 : index
    %96 = memref.load %arg11[%c6_28] : memref<64xf32, #tpu.memory_space<smem>>
    %97 = vector.broadcast %96 : f32 to vector<2x128xf32>
    %98 = arith.mulf %97, %95 : vector<2x128xf32>
    %99 = arith.addf %87, %98 : vector<2x128xf32>
    %c7 = arith.constant 7 : index
    %100 = memref.load %arg10[%c7] : memref<64xf32, #tpu.memory_space<smem>>
    %101 = vector.broadcast %100 : f32 to vector<2x128xf32>
    %102 = arith.mulf %8, %101 : vector<2x128xf32>
    %103 = vector.extract_strided_slice %14 {offsets = [0, 7], sizes = [2, 1], strides = [1, 1]} : vector<2x64xf32> to vector<2x1xf32>
    %104 = vector.broadcast %103 : vector<2x1xf32> to vector<2x128xf32>
    %105 = arith.addf %102, %104 : vector<2x128xf32>
    %cst_29 = arith.constant 0.000000e+00 : f32
    %106 = vector.broadcast %cst_29 : f32 to vector<2x128xf32>
    %107 = arith.maximumf %105, %106 : vector<2x128xf32>
    %c7_30 = arith.constant 7 : index
    %108 = memref.load %arg11[%c7_30] : memref<64xf32, #tpu.memory_space<smem>>
    %109 = vector.broadcast %108 : f32 to vector<2x128xf32>
    %110 = arith.mulf %109, %107 : vector<2x128xf32>
    %111 = arith.addf %99, %110 : vector<2x128xf32>
    %c8 = arith.constant 8 : index
    %112 = memref.load %arg10[%c8] : memref<64xf32, #tpu.memory_space<smem>>
    %113 = vector.broadcast %112 : f32 to vector<2x128xf32>
    %114 = arith.mulf %8, %113 : vector<2x128xf32>
    %115 = vector.extract_strided_slice %14 {offsets = [0, 8], sizes = [2, 1], strides = [1, 1]} : vector<2x64xf32> to vector<2x1xf32>
    %116 = vector.broadcast %115 : vector<2x1xf32> to vector<2x128xf32>
    %117 = arith.addf %114, %116 : vector<2x128xf32>
    %cst_31 = arith.constant 0.000000e+00 : f32
    %118 = vector.broadcast %cst_31 : f32 to vector<2x128xf32>
    %119 = arith.maximumf %117, %118 : vector<2x128xf32>
    %c8_32 = arith.constant 8 : index
    %120 = memref.load %arg11[%c8_32] : memref<64xf32, #tpu.memory_space<smem>>
    %121 = vector.broadcast %120 : f32 to vector<2x128xf32>
    %122 = arith.mulf %121, %119 : vector<2x128xf32>
    %123 = arith.addf %111, %122 : vector<2x128xf32>
    %c9 = arith.constant 9 : index
    %124 = memref.load %arg10[%c9] : memref<64xf32, #tpu.memory_space<smem>>
    %125 = vector.broadcast %124 : f32 to vector<2x128xf32>
    %126 = arith.mulf %8, %125 : vector<2x128xf32>
    %127 = vector.extract_strided_slice %14 {offsets = [0, 9], sizes = [2, 1], strides = [1, 1]} : vector<2x64xf32> to vector<2x1xf32>
    %128 = vector.broadcast %127 : vector<2x1xf32> to vector<2x128xf32>
    %129 = arith.addf %126, %128 : vector<2x128xf32>
    %cst_33 = arith.constant 0.000000e+00 : f32
    %130 = vector.broadcast %cst_33 : f32 to vector<2x128xf32>
    %131 = arith.maximumf %129, %130 : vector<2x128xf32>
    %c9_34 = arith.constant 9 : index
    %132 = memref.load %arg11[%c9_34] : memref<64xf32, #tpu.memory_space<smem>>
    %133 = vector.broadcast %132 : f32 to vector<2x128xf32>
    %134 = arith.mulf %133, %131 : vector<2x128xf32>
    %135 = arith.addf %123, %134 : vector<2x128xf32>
    %c10 = arith.constant 10 : index
    %136 = memref.load %arg10[%c10] : memref<64xf32, #tpu.memory_space<smem>>
    %137 = vector.broadcast %136 : f32 to vector<2x128xf32>
    %138 = arith.mulf %8, %137 : vector<2x128xf32>
    %139 = vector.extract_strided_slice %14 {offsets = [0, 10], sizes = [2, 1], strides = [1, 1]} : vector<2x64xf32> to vector<2x1xf32>
    %140 = vector.broadcast %139 : vector<2x1xf32> to vector<2x128xf32>
    %141 = arith.addf %138, %140 : vector<2x128xf32>
    %cst_35 = arith.constant 0.000000e+00 : f32
    %142 = vector.broadcast %cst_35 : f32 to vector<2x128xf32>
    %143 = arith.maximumf %141, %142 : vector<2x128xf32>
    %c10_36 = arith.constant 10 : index
    %144 = memref.load %arg11[%c10_36] : memref<64xf32, #tpu.memory_space<smem>>
    %145 = vector.broadcast %144 : f32 to vector<2x128xf32>
    %146 = arith.mulf %145, %143 : vector<2x128xf32>
    %147 = arith.addf %135, %146 : vector<2x128xf32>
    %c11 = arith.constant 11 : index
    %148 = memref.load %arg10[%c11] : memref<64xf32, #tpu.memory_space<smem>>
    %149 = vector.broadcast %148 : f32 to vector<2x128xf32>
    %150 = arith.mulf %8, %149 : vector<2x128xf32>
    %151 = vector.extract_strided_slice %14 {offsets = [0, 11], sizes = [2, 1], strides = [1, 1]} : vector<2x64xf32> to vector<2x1xf32>
    %152 = vector.broadcast %151 : vector<2x1xf32> to vector<2x128xf32>
    %153 = arith.addf %150, %152 : vector<2x128xf32>
    %cst_37 = arith.constant 0.000000e+00 : f32
    %154 = vector.broadcast %cst_37 : f32 to vector<2x128xf32>
    %155 = arith.maximumf %153, %154 : vector<2x128xf32>
    %c11_38 = arith.constant 11 : index
    %156 = memref.load %arg11[%c11_38] : memref<64xf32, #tpu.memory_space<smem>>
    %157 = vector.broadcast %156 : f32 to vector<2x128xf32>
    %158 = arith.mulf %157, %155 : vector<2x128xf32>
    %159 = arith.addf %147, %158 : vector<2x128xf32>
    %c12 = arith.constant 12 : index
    %160 = memref.load %arg10[%c12] : memref<64xf32, #tpu.memory_space<smem>>
    %161 = vector.broadcast %160 : f32 to vector<2x128xf32>
    %162 = arith.mulf %8, %161 : vector<2x128xf32>
    %163 = vector.extract_strided_slice %14 {offsets = [0, 12], sizes = [2, 1], strides = [1, 1]} : vector<2x64xf32> to vector<2x1xf32>
    %164 = vector.broadcast %163 : vector<2x1xf32> to vector<2x128xf32>
    %165 = arith.addf %162, %164 : vector<2x128xf32>
    %cst_39 = arith.constant 0.000000e+00 : f32
    %166 = vector.broadcast %cst_39 : f32 to vector<2x128xf32>
    %167 = arith.maximumf %165, %166 : vector<2x128xf32>
    %c12_40 = arith.constant 12 : index
    %168 = memref.load %arg11[%c12_40] : memref<64xf32, #tpu.memory_space<smem>>
    %169 = vector.broadcast %168 : f32 to vector<2x128xf32>
    %170 = arith.mulf %169, %167 : vector<2x128xf32>
    %171 = arith.addf %159, %170 : vector<2x128xf32>
    %c13 = arith.constant 13 : index
    %172 = memref.load %arg10[%c13] : memref<64xf32, #tpu.memory_space<smem>>
    %173 = vector.broadcast %172 : f32 to vector<2x128xf32>
    %174 = arith.mulf %8, %173 : vector<2x128xf32>
    %175 = vector.extract_strided_slice %14 {offsets = [0, 13], sizes = [2, 1], strides = [1, 1]} : vector<2x64xf32> to vector<2x1xf32>
    %176 = vector.broadcast %175 : vector<2x1xf32> to vector<2x128xf32>
    %177 = arith.addf %174, %176 : vector<2x128xf32>
    %cst_41 = arith.constant 0.000000e+00 : f32
    %178 = vector.broadcast %cst_41 : f32 to vector<2x128xf32>
    %179 = arith.maximumf %177, %178 : vector<2x128xf32>
    %c13_42 = arith.constant 13 : index
    %180 = memref.load %arg11[%c13_42] : memref<64xf32, #tpu.memory_space<smem>>
    %181 = vector.broadcast %180 : f32 to vector<2x128xf32>
    %182 = arith.mulf %181, %179 : vector<2x128xf32>
    %183 = arith.addf %171, %182 : vector<2x128xf32>
    %c14 = arith.constant 14 : index
    %184 = memref.load %arg10[%c14] : memref<64xf32, #tpu.memory_space<smem>>
    %185 = vector.broadcast %184 : f32 to vector<2x128xf32>
    %186 = arith.mulf %8, %185 : vector<2x128xf32>
    %187 = vector.extract_strided_slice %14 {offsets = [0, 14], sizes = [2, 1], strides = [1, 1]} : vector<2x64xf32> to vector<2x1xf32>
    %188 = vector.broadcast %187 : vector<2x1xf32> to vector<2x128xf32>
    %189 = arith.addf %186, %188 : vector<2x128xf32>
    %cst_43 = arith.constant 0.000000e+00 : f32
    %190 = vector.broadcast %cst_43 : f32 to vector<2x128xf32>
    %191 = arith.maximumf %189, %190 : vector<2x128xf32>
    %c14_44 = arith.constant 14 : index
    %192 = memref.load %arg11[%c14_44] : memref<64xf32, #tpu.memory_space<smem>>
    %193 = vector.broadcast %192 : f32 to vector<2x128xf32>
    %194 = arith.mulf %193, %191 : vector<2x128xf32>
    %195 = arith.addf %183, %194 : vector<2x128xf32>
    %c15 = arith.constant 15 : index
    %196 = memref.load %arg10[%c15] : memref<64xf32, #tpu.memory_space<smem>>
    %197 = vector.broadcast %196 : f32 to vector<2x128xf32>
    %198 = arith.mulf %8, %197 : vector<2x128xf32>
    %199 = vector.extract_strided_slice %14 {offsets = [0, 15], sizes = [2, 1], strides = [1, 1]} : vector<2x64xf32> to vector<2x1xf32>
    %200 = vector.broadcast %199 : vector<2x1xf32> to vector<2x128xf32>
    %201 = arith.addf %198, %200 : vector<2x128xf32>
    %cst_45 = arith.constant 0.000000e+00 : f32
    %202 = vector.broadcast %cst_45 : f32 to vector<2x128xf32>
    %203 = arith.maximumf %201, %202 : vector<2x128xf32>
    %c15_46 = arith.constant 15 : index
    %204 = memref.load %arg11[%c15_46] : memref<64xf32, #tpu.memory_space<smem>>
    %205 = vector.broadcast %204 : f32 to vector<2x128xf32>
    %206 = arith.mulf %205, %203 : vector<2x128xf32>
    %207 = arith.addf %195, %206 : vector<2x128xf32>
    %c16 = arith.constant 16 : index
    %208 = memref.load %arg10[%c16] : memref<64xf32, #tpu.memory_space<smem>>
    %209 = vector.broadcast %208 : f32 to vector<2x128xf32>
    %210 = arith.mulf %8, %209 : vector<2x128xf32>
    %211 = vector.extract_strided_slice %14 {offsets = [0, 16], sizes = [2, 1], strides = [1, 1]} : vector<2x64xf32> to vector<2x1xf32>
    %212 = vector.broadcast %211 : vector<2x1xf32> to vector<2x128xf32>
    %213 = arith.addf %210, %212 : vector<2x128xf32>
    %cst_47 = arith.constant 0.000000e+00 : f32
    %214 = vector.broadcast %cst_47 : f32 to vector<2x128xf32>
    %215 = arith.maximumf %213, %214 : vector<2x128xf32>
    %c16_48 = arith.constant 16 : index
    %216 = memref.load %arg11[%c16_48] : memref<64xf32, #tpu.memory_space<smem>>
    %217 = vector.broadcast %216 : f32 to vector<2x128xf32>
    %218 = arith.mulf %217, %215 : vector<2x128xf32>
    %219 = arith.addf %207, %218 : vector<2x128xf32>
    %c17 = arith.constant 17 : index
    %220 = memref.load %arg10[%c17] : memref<64xf32, #tpu.memory_space<smem>>
    %221 = vector.broadcast %220 : f32 to vector<2x128xf32>
    %222 = arith.mulf %8, %221 : vector<2x128xf32>
    %223 = vector.extract_strided_slice %14 {offsets = [0, 17], sizes = [2, 1], strides = [1, 1]} : vector<2x64xf32> to vector<2x1xf32>
    %224 = vector.broadcast %223 : vector<2x1xf32> to vector<2x128xf32>
    %225 = arith.addf %222, %224 : vector<2x128xf32>
    %cst_49 = arith.constant 0.000000e+00 : f32
    %226 = vector.broadcast %cst_49 : f32 to vector<2x128xf32>
    %227 = arith.maximumf %225, %226 : vector<2x128xf32>
    %c17_50 = arith.constant 17 : index
    %228 = memref.load %arg11[%c17_50] : memref<64xf32, #tpu.memory_space<smem>>
    %229 = vector.broadcast %228 : f32 to vector<2x128xf32>
    %230 = arith.mulf %229, %227 : vector<2x128xf32>
    %231 = arith.addf %219, %230 : vector<2x128xf32>
    %c18 = arith.constant 18 : index
    %232 = memref.load %arg10[%c18] : memref<64xf32, #tpu.memory_space<smem>>
    %233 = vector.broadcast %232 : f32 to vector<2x128xf32>
    %234 = arith.mulf %8, %233 : vector<2x128xf32>
    %235 = vector.extract_strided_slice %14 {offsets = [0, 18], sizes = [2, 1], strides = [1, 1]} : vector<2x64xf32> to vector<2x1xf32>
    %236 = vector.broadcast %235 : vector<2x1xf32> to vector<2x128xf32>
    %237 = arith.addf %234, %236 : vector<2x128xf32>
    %cst_51 = arith.constant 0.000000e+00 : f32
    %238 = vector.broadcast %cst_51 : f32 to vector<2x128xf32>
    %239 = arith.maximumf %237, %238 : vector<2x128xf32>
    %c18_52 = arith.constant 18 : index
    %240 = memref.load %arg11[%c18_52] : memref<64xf32, #tpu.memory_space<smem>>
    %241 = vector.broadcast %240 : f32 to vector<2x128xf32>
    %242 = arith.mulf %241, %239 : vector<2x128xf32>
    %243 = arith.addf %231, %242 : vector<2x128xf32>
    %c19 = arith.constant 19 : index
    %244 = memref.load %arg10[%c19] : memref<64xf32, #tpu.memory_space<smem>>
    %245 = vector.broadcast %244 : f32 to vector<2x128xf32>
    %246 = arith.mulf %8, %245 : vector<2x128xf32>
    %247 = vector.extract_strided_slice %14 {offsets = [0, 19], sizes = [2, 1], strides = [1, 1]} : vector<2x64xf32> to vector<2x1xf32>
    %248 = vector.broadcast %247 : vector<2x1xf32> to vector<2x128xf32>
    %249 = arith.addf %246, %248 : vector<2x128xf32>
    %cst_53 = arith.constant 0.000000e+00 : f32
    %250 = vector.broadcast %cst_53 : f32 to vector<2x128xf32>
    %251 = arith.maximumf %249, %250 : vector<2x128xf32>
    %c19_54 = arith.constant 19 : index
    %252 = memref.load %arg11[%c19_54] : memref<64xf32, #tpu.memory_space<smem>>
    %253 = vector.broadcast %252 : f32 to vector<2x128xf32>
    %254 = arith.mulf %253, %251 : vector<2x128xf32>
    %255 = arith.addf %243, %254 : vector<2x128xf32>
    %c20 = arith.constant 20 : index
    %256 = memref.load %arg10[%c20] : memref<64xf32, #tpu.memory_space<smem>>
    %257 = vector.broadcast %256 : f32 to vector<2x128xf32>
    %258 = arith.mulf %8, %257 : vector<2x128xf32>
    %259 = vector.extract_strided_slice %14 {offsets = [0, 20], sizes = [2, 1], strides = [1, 1]} : vector<2x64xf32> to vector<2x1xf32>
    %260 = vector.broadcast %259 : vector<2x1xf32> to vector<2x128xf32>
    %261 = arith.addf %258, %260 : vector<2x128xf32>
    %cst_55 = arith.constant 0.000000e+00 : f32
    %262 = vector.broadcast %cst_55 : f32 to vector<2x128xf32>
    %263 = arith.maximumf %261, %262 : vector<2x128xf32>
    %c20_56 = arith.constant 20 : index
    %264 = memref.load %arg11[%c20_56] : memref<64xf32, #tpu.memory_space<smem>>
    %265 = vector.broadcast %264 : f32 to vector<2x128xf32>
    %266 = arith.mulf %265, %263 : vector<2x128xf32>
    %267 = arith.addf %255, %266 : vector<2x128xf32>
    %c21 = arith.constant 21 : index
    %268 = memref.load %arg10[%c21] : memref<64xf32, #tpu.memory_space<smem>>
    %269 = vector.broadcast %268 : f32 to vector<2x128xf32>
    %270 = arith.mulf %8, %269 : vector<2x128xf32>
    %271 = vector.extract_strided_slice %14 {offsets = [0, 21], sizes = [2, 1], strides = [1, 1]} : vector<2x64xf32> to vector<2x1xf32>
    %272 = vector.broadcast %271 : vector<2x1xf32> to vector<2x128xf32>
    %273 = arith.addf %270, %272 : vector<2x128xf32>
    %cst_57 = arith.constant 0.000000e+00 : f32
    %274 = vector.broadcast %cst_57 : f32 to vector<2x128xf32>
    %275 = arith.maximumf %273, %274 : vector<2x128xf32>
    %c21_58 = arith.constant 21 : index
    %276 = memref.load %arg11[%c21_58] : memref<64xf32, #tpu.memory_space<smem>>
    %277 = vector.broadcast %276 : f32 to vector<2x128xf32>
    %278 = arith.mulf %277, %275 : vector<2x128xf32>
    %279 = arith.addf %267, %278 : vector<2x128xf32>
    %c22 = arith.constant 22 : index
    %280 = memref.load %arg10[%c22] : memref<64xf32, #tpu.memory_space<smem>>
    %281 = vector.broadcast %280 : f32 to vector<2x128xf32>
    %282 = arith.mulf %8, %281 : vector<2x128xf32>
    %283 = vector.extract_strided_slice %14 {offsets = [0, 22], sizes = [2, 1], strides = [1, 1]} : vector<2x64xf32> to vector<2x1xf32>
    %284 = vector.broadcast %283 : vector<2x1xf32> to vector<2x128xf32>
    %285 = arith.addf %282, %284 : vector<2x128xf32>
    %cst_59 = arith.constant 0.000000e+00 : f32
    %286 = vector.broadcast %cst_59 : f32 to vector<2x128xf32>
    %287 = arith.maximumf %285, %286 : vector<2x128xf32>
    %c22_60 = arith.constant 22 : index
    %288 = memref.load %arg11[%c22_60] : memref<64xf32, #tpu.memory_space<smem>>
    %289 = vector.broadcast %288 : f32 to vector<2x128xf32>
    %290 = arith.mulf %289, %287 : vector<2x128xf32>
    %291 = arith.addf %279, %290 : vector<2x128xf32>
    %c23 = arith.constant 23 : index
    %292 = memref.load %arg10[%c23] : memref<64xf32, #tpu.memory_space<smem>>
    %293 = vector.broadcast %292 : f32 to vector<2x128xf32>
    %294 = arith.mulf %8, %293 : vector<2x128xf32>
    %295 = vector.extract_strided_slice %14 {offsets = [0, 23], sizes = [2, 1], strides = [1, 1]} : vector<2x64xf32> to vector<2x1xf32>
    %296 = vector.broadcast %295 : vector<2x1xf32> to vector<2x128xf32>
    %297 = arith.addf %294, %296 : vector<2x128xf32>
    %cst_61 = arith.constant 0.000000e+00 : f32
    %298 = vector.broadcast %cst_61 : f32 to vector<2x128xf32>
    %299 = arith.maximumf %297, %298 : vector<2x128xf32>
    %c23_62 = arith.constant 23 : index
    %300 = memref.load %arg11[%c23_62] : memref<64xf32, #tpu.memory_space<smem>>
    %301 = vector.broadcast %300 : f32 to vector<2x128xf32>
    %302 = arith.mulf %301, %299 : vector<2x128xf32>
    %303 = arith.addf %291, %302 : vector<2x128xf32>
    %c24 = arith.constant 24 : index
    %304 = memref.load %arg10[%c24] : memref<64xf32, #tpu.memory_space<smem>>
    %305 = vector.broadcast %304 : f32 to vector<2x128xf32>
    %306 = arith.mulf %8, %305 : vector<2x128xf32>
    %307 = vector.extract_strided_slice %14 {offsets = [0, 24], sizes = [2, 1], strides = [1, 1]} : vector<2x64xf32> to vector<2x1xf32>
    %308 = vector.broadcast %307 : vector<2x1xf32> to vector<2x128xf32>
    %309 = arith.addf %306, %308 : vector<2x128xf32>
    %cst_63 = arith.constant 0.000000e+00 : f32
    %310 = vector.broadcast %cst_63 : f32 to vector<2x128xf32>
    %311 = arith.maximumf %309, %310 : vector<2x128xf32>
    %c24_64 = arith.constant 24 : index
    %312 = memref.load %arg11[%c24_64] : memref<64xf32, #tpu.memory_space<smem>>
    %313 = vector.broadcast %312 : f32 to vector<2x128xf32>
    %314 = arith.mulf %313, %311 : vector<2x128xf32>
    %315 = arith.addf %303, %314 : vector<2x128xf32>
    %c25 = arith.constant 25 : index
    %316 = memref.load %arg10[%c25] : memref<64xf32, #tpu.memory_space<smem>>
    %317 = vector.broadcast %316 : f32 to vector<2x128xf32>
    %318 = arith.mulf %8, %317 : vector<2x128xf32>
    %319 = vector.extract_strided_slice %14 {offsets = [0, 25], sizes = [2, 1], strides = [1, 1]} : vector<2x64xf32> to vector<2x1xf32>
    %320 = vector.broadcast %319 : vector<2x1xf32> to vector<2x128xf32>
    %321 = arith.addf %318, %320 : vector<2x128xf32>
    %cst_65 = arith.constant 0.000000e+00 : f32
    %322 = vector.broadcast %cst_65 : f32 to vector<2x128xf32>
    %323 = arith.maximumf %321, %322 : vector<2x128xf32>
    %c25_66 = arith.constant 25 : index
    %324 = memref.load %arg11[%c25_66] : memref<64xf32, #tpu.memory_space<smem>>
    %325 = vector.broadcast %324 : f32 to vector<2x128xf32>
    %326 = arith.mulf %325, %323 : vector<2x128xf32>
    %327 = arith.addf %315, %326 : vector<2x128xf32>
    %c26 = arith.constant 26 : index
    %328 = memref.load %arg10[%c26] : memref<64xf32, #tpu.memory_space<smem>>
    %329 = vector.broadcast %328 : f32 to vector<2x128xf32>
    %330 = arith.mulf %8, %329 : vector<2x128xf32>
    %331 = vector.extract_strided_slice %14 {offsets = [0, 26], sizes = [2, 1], strides = [1, 1]} : vector<2x64xf32> to vector<2x1xf32>
    %332 = vector.broadcast %331 : vector<2x1xf32> to vector<2x128xf32>
    %333 = arith.addf %330, %332 : vector<2x128xf32>
    %cst_67 = arith.constant 0.000000e+00 : f32
    %334 = vector.broadcast %cst_67 : f32 to vector<2x128xf32>
    %335 = arith.maximumf %333, %334 : vector<2x128xf32>
    %c26_68 = arith.constant 26 : index
    %336 = memref.load %arg11[%c26_68] : memref<64xf32, #tpu.memory_space<smem>>
    %337 = vector.broadcast %336 : f32 to vector<2x128xf32>
    %338 = arith.mulf %337, %335 : vector<2x128xf32>
    %339 = arith.addf %327, %338 : vector<2x128xf32>
    %c27 = arith.constant 27 : index
    %340 = memref.load %arg10[%c27] : memref<64xf32, #tpu.memory_space<smem>>
    %341 = vector.broadcast %340 : f32 to vector<2x128xf32>
    %342 = arith.mulf %8, %341 : vector<2x128xf32>
    %343 = vector.extract_strided_slice %14 {offsets = [0, 27], sizes = [2, 1], strides = [1, 1]} : vector<2x64xf32> to vector<2x1xf32>
    %344 = vector.broadcast %343 : vector<2x1xf32> to vector<2x128xf32>
    %345 = arith.addf %342, %344 : vector<2x128xf32>
    %cst_69 = arith.constant 0.000000e+00 : f32
    %346 = vector.broadcast %cst_69 : f32 to vector<2x128xf32>
    %347 = arith.maximumf %345, %346 : vector<2x128xf32>
    %c27_70 = arith.constant 27 : index
    %348 = memref.load %arg11[%c27_70] : memref<64xf32, #tpu.memory_space<smem>>
    %349 = vector.broadcast %348 : f32 to vector<2x128xf32>
    %350 = arith.mulf %349, %347 : vector<2x128xf32>
    %351 = arith.addf %339, %350 : vector<2x128xf32>
    %c28 = arith.constant 28 : index
    %352 = memref.load %arg10[%c28] : memref<64xf32, #tpu.memory_space<smem>>
    %353 = vector.broadcast %352 : f32 to vector<2x128xf32>
    %354 = arith.mulf %8, %353 : vector<2x128xf32>
    %355 = vector.extract_strided_slice %14 {offsets = [0, 28], sizes = [2, 1], strides = [1, 1]} : vector<2x64xf32> to vector<2x1xf32>
    %356 = vector.broadcast %355 : vector<2x1xf32> to vector<2x128xf32>
    %357 = arith.addf %354, %356 : vector<2x128xf32>
    %cst_71 = arith.constant 0.000000e+00 : f32
    %358 = vector.broadcast %cst_71 : f32 to vector<2x128xf32>
    %359 = arith.maximumf %357, %358 : vector<2x128xf32>
    %c28_72 = arith.constant 28 : index
    %360 = memref.load %arg11[%c28_72] : memref<64xf32, #tpu.memory_space<smem>>
    %361 = vector.broadcast %360 : f32 to vector<2x128xf32>
    %362 = arith.mulf %361, %359 : vector<2x128xf32>
    %363 = arith.addf %351, %362 : vector<2x128xf32>
    %c29 = arith.constant 29 : index
    %364 = memref.load %arg10[%c29] : memref<64xf32, #tpu.memory_space<smem>>
    %365 = vector.broadcast %364 : f32 to vector<2x128xf32>
    %366 = arith.mulf %8, %365 : vector<2x128xf32>
    %367 = vector.extract_strided_slice %14 {offsets = [0, 29], sizes = [2, 1], strides = [1, 1]} : vector<2x64xf32> to vector<2x1xf32>
    %368 = vector.broadcast %367 : vector<2x1xf32> to vector<2x128xf32>
    %369 = arith.addf %366, %368 : vector<2x128xf32>
    %cst_73 = arith.constant 0.000000e+00 : f32
    %370 = vector.broadcast %cst_73 : f32 to vector<2x128xf32>
    %371 = arith.maximumf %369, %370 : vector<2x128xf32>
    %c29_74 = arith.constant 29 : index
    %372 = memref.load %arg11[%c29_74] : memref<64xf32, #tpu.memory_space<smem>>
    %373 = vector.broadcast %372 : f32 to vector<2x128xf32>
    %374 = arith.mulf %373, %371 : vector<2x128xf32>
    %375 = arith.addf %363, %374 : vector<2x128xf32>
    %c30 = arith.constant 30 : index
    %376 = memref.load %arg10[%c30] : memref<64xf32, #tpu.memory_space<smem>>
    %377 = vector.broadcast %376 : f32 to vector<2x128xf32>
    %378 = arith.mulf %8, %377 : vector<2x128xf32>
    %379 = vector.extract_strided_slice %14 {offsets = [0, 30], sizes = [2, 1], strides = [1, 1]} : vector<2x64xf32> to vector<2x1xf32>
    %380 = vector.broadcast %379 : vector<2x1xf32> to vector<2x128xf32>
    %381 = arith.addf %378, %380 : vector<2x128xf32>
    %cst_75 = arith.constant 0.000000e+00 : f32
    %382 = vector.broadcast %cst_75 : f32 to vector<2x128xf32>
    %383 = arith.maximumf %381, %382 : vector<2x128xf32>
    %c30_76 = arith.constant 30 : index
    %384 = memref.load %arg11[%c30_76] : memref<64xf32, #tpu.memory_space<smem>>
    %385 = vector.broadcast %384 : f32 to vector<2x128xf32>
    %386 = arith.mulf %385, %383 : vector<2x128xf32>
    %387 = arith.addf %375, %386 : vector<2x128xf32>
    %c31 = arith.constant 31 : index
    %388 = memref.load %arg10[%c31] : memref<64xf32, #tpu.memory_space<smem>>
    %389 = vector.broadcast %388 : f32 to vector<2x128xf32>
    %390 = arith.mulf %8, %389 : vector<2x128xf32>
    %391 = vector.extract_strided_slice %14 {offsets = [0, 31], sizes = [2, 1], strides = [1, 1]} : vector<2x64xf32> to vector<2x1xf32>
    %392 = vector.broadcast %391 : vector<2x1xf32> to vector<2x128xf32>
    %393 = arith.addf %390, %392 : vector<2x128xf32>
    %cst_77 = arith.constant 0.000000e+00 : f32
    %394 = vector.broadcast %cst_77 : f32 to vector<2x128xf32>
    %395 = arith.maximumf %393, %394 : vector<2x128xf32>
    %c31_78 = arith.constant 31 : index
    %396 = memref.load %arg11[%c31_78] : memref<64xf32, #tpu.memory_space<smem>>
    %397 = vector.broadcast %396 : f32 to vector<2x128xf32>
    %398 = arith.mulf %397, %395 : vector<2x128xf32>
    %399 = arith.addf %387, %398 : vector<2x128xf32>
    %c32 = arith.constant 32 : index
    %400 = memref.load %arg10[%c32] : memref<64xf32, #tpu.memory_space<smem>>
    %401 = vector.broadcast %400 : f32 to vector<2x128xf32>
    %402 = arith.mulf %8, %401 : vector<2x128xf32>
    %403 = vector.extract_strided_slice %14 {offsets = [0, 32], sizes = [2, 1], strides = [1, 1]} : vector<2x64xf32> to vector<2x1xf32>
    %404 = vector.broadcast %403 : vector<2x1xf32> to vector<2x128xf32>
    %405 = arith.addf %402, %404 : vector<2x128xf32>
    %cst_79 = arith.constant 0.000000e+00 : f32
    %406 = vector.broadcast %cst_79 : f32 to vector<2x128xf32>
    %407 = arith.maximumf %405, %406 : vector<2x128xf32>
    %c32_80 = arith.constant 32 : index
    %408 = memref.load %arg11[%c32_80] : memref<64xf32, #tpu.memory_space<smem>>
    %409 = vector.broadcast %408 : f32 to vector<2x128xf32>
    %410 = arith.mulf %409, %407 : vector<2x128xf32>
    %411 = arith.addf %399, %410 : vector<2x128xf32>
    %c33 = arith.constant 33 : index
    %412 = memref.load %arg10[%c33] : memref<64xf32, #tpu.memory_space<smem>>
    %413 = vector.broadcast %412 : f32 to vector<2x128xf32>
    %414 = arith.mulf %8, %413 : vector<2x128xf32>
    %415 = vector.extract_strided_slice %14 {offsets = [0, 33], sizes = [2, 1], strides = [1, 1]} : vector<2x64xf32> to vector<2x1xf32>
    %416 = vector.broadcast %415 : vector<2x1xf32> to vector<2x128xf32>
    %417 = arith.addf %414, %416 : vector<2x128xf32>
    %cst_81 = arith.constant 0.000000e+00 : f32
    %418 = vector.broadcast %cst_81 : f32 to vector<2x128xf32>
    %419 = arith.maximumf %417, %418 : vector<2x128xf32>
    %c33_82 = arith.constant 33 : index
    %420 = memref.load %arg11[%c33_82] : memref<64xf32, #tpu.memory_space<smem>>
    %421 = vector.broadcast %420 : f32 to vector<2x128xf32>
    %422 = arith.mulf %421, %419 : vector<2x128xf32>
    %423 = arith.addf %411, %422 : vector<2x128xf32>
    %c34 = arith.constant 34 : index
    %424 = memref.load %arg10[%c34] : memref<64xf32, #tpu.memory_space<smem>>
    %425 = vector.broadcast %424 : f32 to vector<2x128xf32>
    %426 = arith.mulf %8, %425 : vector<2x128xf32>
    %427 = vector.extract_strided_slice %14 {offsets = [0, 34], sizes = [2, 1], strides = [1, 1]} : vector<2x64xf32> to vector<2x1xf32>
    %428 = vector.broadcast %427 : vector<2x1xf32> to vector<2x128xf32>
    %429 = arith.addf %426, %428 : vector<2x128xf32>
    %cst_83 = arith.constant 0.000000e+00 : f32
    %430 = vector.broadcast %cst_83 : f32 to vector<2x128xf32>
    %431 = arith.maximumf %429, %430 : vector<2x128xf32>
    %c34_84 = arith.constant 34 : index
    %432 = memref.load %arg11[%c34_84] : memref<64xf32, #tpu.memory_space<smem>>
    %433 = vector.broadcast %432 : f32 to vector<2x128xf32>
    %434 = arith.mulf %433, %431 : vector<2x128xf32>
    %435 = arith.addf %423, %434 : vector<2x128xf32>
    %c35 = arith.constant 35 : index
    %436 = memref.load %arg10[%c35] : memref<64xf32, #tpu.memory_space<smem>>
    %437 = vector.broadcast %436 : f32 to vector<2x128xf32>
    %438 = arith.mulf %8, %437 : vector<2x128xf32>
    %439 = vector.extract_strided_slice %14 {offsets = [0, 35], sizes = [2, 1], strides = [1, 1]} : vector<2x64xf32> to vector<2x1xf32>
    %440 = vector.broadcast %439 : vector<2x1xf32> to vector<2x128xf32>
    %441 = arith.addf %438, %440 : vector<2x128xf32>
    %cst_85 = arith.constant 0.000000e+00 : f32
    %442 = vector.broadcast %cst_85 : f32 to vector<2x128xf32>
    %443 = arith.maximumf %441, %442 : vector<2x128xf32>
    %c35_86 = arith.constant 35 : index
    %444 = memref.load %arg11[%c35_86] : memref<64xf32, #tpu.memory_space<smem>>
    %445 = vector.broadcast %444 : f32 to vector<2x128xf32>
    %446 = arith.mulf %445, %443 : vector<2x128xf32>
    %447 = arith.addf %435, %446 : vector<2x128xf32>
    %c36 = arith.constant 36 : index
    %448 = memref.load %arg10[%c36] : memref<64xf32, #tpu.memory_space<smem>>
    %449 = vector.broadcast %448 : f32 to vector<2x128xf32>
    %450 = arith.mulf %8, %449 : vector<2x128xf32>
    %451 = vector.extract_strided_slice %14 {offsets = [0, 36], sizes = [2, 1], strides = [1, 1]} : vector<2x64xf32> to vector<2x1xf32>
    %452 = vector.broadcast %451 : vector<2x1xf32> to vector<2x128xf32>
    %453 = arith.addf %450, %452 : vector<2x128xf32>
    %cst_87 = arith.constant 0.000000e+00 : f32
    %454 = vector.broadcast %cst_87 : f32 to vector<2x128xf32>
    %455 = arith.maximumf %453, %454 : vector<2x128xf32>
    %c36_88 = arith.constant 36 : index
    %456 = memref.load %arg11[%c36_88] : memref<64xf32, #tpu.memory_space<smem>>
    %457 = vector.broadcast %456 : f32 to vector<2x128xf32>
    %458 = arith.mulf %457, %455 : vector<2x128xf32>
    %459 = arith.addf %447, %458 : vector<2x128xf32>
    %c37 = arith.constant 37 : index
    %460 = memref.load %arg10[%c37] : memref<64xf32, #tpu.memory_space<smem>>
    %461 = vector.broadcast %460 : f32 to vector<2x128xf32>
    %462 = arith.mulf %8, %461 : vector<2x128xf32>
    %463 = vector.extract_strided_slice %14 {offsets = [0, 37], sizes = [2, 1], strides = [1, 1]} : vector<2x64xf32> to vector<2x1xf32>
    %464 = vector.broadcast %463 : vector<2x1xf32> to vector<2x128xf32>
    %465 = arith.addf %462, %464 : vector<2x128xf32>
    %cst_89 = arith.constant 0.000000e+00 : f32
    %466 = vector.broadcast %cst_89 : f32 to vector<2x128xf32>
    %467 = arith.maximumf %465, %466 : vector<2x128xf32>
    %c37_90 = arith.constant 37 : index
    %468 = memref.load %arg11[%c37_90] : memref<64xf32, #tpu.memory_space<smem>>
    %469 = vector.broadcast %468 : f32 to vector<2x128xf32>
    %470 = arith.mulf %469, %467 : vector<2x128xf32>
    %471 = arith.addf %459, %470 : vector<2x128xf32>
    %c38 = arith.constant 38 : index
    %472 = memref.load %arg10[%c38] : memref<64xf32, #tpu.memory_space<smem>>
    %473 = vector.broadcast %472 : f32 to vector<2x128xf32>
    %474 = arith.mulf %8, %473 : vector<2x128xf32>
    %475 = vector.extract_strided_slice %14 {offsets = [0, 38], sizes = [2, 1], strides = [1, 1]} : vector<2x64xf32> to vector<2x1xf32>
    %476 = vector.broadcast %475 : vector<2x1xf32> to vector<2x128xf32>
    %477 = arith.addf %474, %476 : vector<2x128xf32>
    %cst_91 = arith.constant 0.000000e+00 : f32
    %478 = vector.broadcast %cst_91 : f32 to vector<2x128xf32>
    %479 = arith.maximumf %477, %478 : vector<2x128xf32>
    %c38_92 = arith.constant 38 : index
    %480 = memref.load %arg11[%c38_92] : memref<64xf32, #tpu.memory_space<smem>>
    %481 = vector.broadcast %480 : f32 to vector<2x128xf32>
    %482 = arith.mulf %481, %479 : vector<2x128xf32>
    %483 = arith.addf %471, %482 : vector<2x128xf32>
    %c39 = arith.constant 39 : index
    %484 = memref.load %arg10[%c39] : memref<64xf32, #tpu.memory_space<smem>>
    %485 = vector.broadcast %484 : f32 to vector<2x128xf32>
    %486 = arith.mulf %8, %485 : vector<2x128xf32>
    %487 = vector.extract_strided_slice %14 {offsets = [0, 39], sizes = [2, 1], strides = [1, 1]} : vector<2x64xf32> to vector<2x1xf32>
    %488 = vector.broadcast %487 : vector<2x1xf32> to vector<2x128xf32>
    %489 = arith.addf %486, %488 : vector<2x128xf32>
    %cst_93 = arith.constant 0.000000e+00 : f32
    %490 = vector.broadcast %cst_93 : f32 to vector<2x128xf32>
    %491 = arith.maximumf %489, %490 : vector<2x128xf32>
    %c39_94 = arith.constant 39 : index
    %492 = memref.load %arg11[%c39_94] : memref<64xf32, #tpu.memory_space<smem>>
    %493 = vector.broadcast %492 : f32 to vector<2x128xf32>
    %494 = arith.mulf %493, %491 : vector<2x128xf32>
    %495 = arith.addf %483, %494 : vector<2x128xf32>
    %c40 = arith.constant 40 : index
    %496 = memref.load %arg10[%c40] : memref<64xf32, #tpu.memory_space<smem>>
    %497 = vector.broadcast %496 : f32 to vector<2x128xf32>
    %498 = arith.mulf %8, %497 : vector<2x128xf32>
    %499 = vector.extract_strided_slice %14 {offsets = [0, 40], sizes = [2, 1], strides = [1, 1]} : vector<2x64xf32> to vector<2x1xf32>
    %500 = vector.broadcast %499 : vector<2x1xf32> to vector<2x128xf32>
    %501 = arith.addf %498, %500 : vector<2x128xf32>
    %cst_95 = arith.constant 0.000000e+00 : f32
    %502 = vector.broadcast %cst_95 : f32 to vector<2x128xf32>
    %503 = arith.maximumf %501, %502 : vector<2x128xf32>
    %c40_96 = arith.constant 40 : index
    %504 = memref.load %arg11[%c40_96] : memref<64xf32, #tpu.memory_space<smem>>
    %505 = vector.broadcast %504 : f32 to vector<2x128xf32>
    %506 = arith.mulf %505, %503 : vector<2x128xf32>
    %507 = arith.addf %495, %506 : vector<2x128xf32>
    %c41 = arith.constant 41 : index
    %508 = memref.load %arg10[%c41] : memref<64xf32, #tpu.memory_space<smem>>
    %509 = vector.broadcast %508 : f32 to vector<2x128xf32>
    %510 = arith.mulf %8, %509 : vector<2x128xf32>
    %511 = vector.extract_strided_slice %14 {offsets = [0, 41], sizes = [2, 1], strides = [1, 1]} : vector<2x64xf32> to vector<2x1xf32>
    %512 = vector.broadcast %511 : vector<2x1xf32> to vector<2x128xf32>
    %513 = arith.addf %510, %512 : vector<2x128xf32>
    %cst_97 = arith.constant 0.000000e+00 : f32
    %514 = vector.broadcast %cst_97 : f32 to vector<2x128xf32>
    %515 = arith.maximumf %513, %514 : vector<2x128xf32>
    %c41_98 = arith.constant 41 : index
    %516 = memref.load %arg11[%c41_98] : memref<64xf32, #tpu.memory_space<smem>>
    %517 = vector.broadcast %516 : f32 to vector<2x128xf32>
    %518 = arith.mulf %517, %515 : vector<2x128xf32>
    %519 = arith.addf %507, %518 : vector<2x128xf32>
    %c42 = arith.constant 42 : index
    %520 = memref.load %arg10[%c42] : memref<64xf32, #tpu.memory_space<smem>>
    %521 = vector.broadcast %520 : f32 to vector<2x128xf32>
    %522 = arith.mulf %8, %521 : vector<2x128xf32>
    %523 = vector.extract_strided_slice %14 {offsets = [0, 42], sizes = [2, 1], strides = [1, 1]} : vector<2x64xf32> to vector<2x1xf32>
    %524 = vector.broadcast %523 : vector<2x1xf32> to vector<2x128xf32>
    %525 = arith.addf %522, %524 : vector<2x128xf32>
    %cst_99 = arith.constant 0.000000e+00 : f32
    %526 = vector.broadcast %cst_99 : f32 to vector<2x128xf32>
    %527 = arith.maximumf %525, %526 : vector<2x128xf32>
    %c42_100 = arith.constant 42 : index
    %528 = memref.load %arg11[%c42_100] : memref<64xf32, #tpu.memory_space<smem>>
    %529 = vector.broadcast %528 : f32 to vector<2x128xf32>
    %530 = arith.mulf %529, %527 : vector<2x128xf32>
    %531 = arith.addf %519, %530 : vector<2x128xf32>
    %c43 = arith.constant 43 : index
    %532 = memref.load %arg10[%c43] : memref<64xf32, #tpu.memory_space<smem>>
    %533 = vector.broadcast %532 : f32 to vector<2x128xf32>
    %534 = arith.mulf %8, %533 : vector<2x128xf32>
    %535 = vector.extract_strided_slice %14 {offsets = [0, 43], sizes = [2, 1], strides = [1, 1]} : vector<2x64xf32> to vector<2x1xf32>
    %536 = vector.broadcast %535 : vector<2x1xf32> to vector<2x128xf32>
    %537 = arith.addf %534, %536 : vector<2x128xf32>
    %cst_101 = arith.constant 0.000000e+00 : f32
    %538 = vector.broadcast %cst_101 : f32 to vector<2x128xf32>
    %539 = arith.maximumf %537, %538 : vector<2x128xf32>
    %c43_102 = arith.constant 43 : index
    %540 = memref.load %arg11[%c43_102] : memref<64xf32, #tpu.memory_space<smem>>
    %541 = vector.broadcast %540 : f32 to vector<2x128xf32>
    %542 = arith.mulf %541, %539 : vector<2x128xf32>
    %543 = arith.addf %531, %542 : vector<2x128xf32>
    %c44 = arith.constant 44 : index
    %544 = memref.load %arg10[%c44] : memref<64xf32, #tpu.memory_space<smem>>
    %545 = vector.broadcast %544 : f32 to vector<2x128xf32>
    %546 = arith.mulf %8, %545 : vector<2x128xf32>
    %547 = vector.extract_strided_slice %14 {offsets = [0, 44], sizes = [2, 1], strides = [1, 1]} : vector<2x64xf32> to vector<2x1xf32>
    %548 = vector.broadcast %547 : vector<2x1xf32> to vector<2x128xf32>
    %549 = arith.addf %546, %548 : vector<2x128xf32>
    %cst_103 = arith.constant 0.000000e+00 : f32
    %550 = vector.broadcast %cst_103 : f32 to vector<2x128xf32>
    %551 = arith.maximumf %549, %550 : vector<2x128xf32>
    %c44_104 = arith.constant 44 : index
    %552 = memref.load %arg11[%c44_104] : memref<64xf32, #tpu.memory_space<smem>>
    %553 = vector.broadcast %552 : f32 to vector<2x128xf32>
    %554 = arith.mulf %553, %551 : vector<2x128xf32>
    %555 = arith.addf %543, %554 : vector<2x128xf32>
    %c45 = arith.constant 45 : index
    %556 = memref.load %arg10[%c45] : memref<64xf32, #tpu.memory_space<smem>>
    %557 = vector.broadcast %556 : f32 to vector<2x128xf32>
    %558 = arith.mulf %8, %557 : vector<2x128xf32>
    %559 = vector.extract_strided_slice %14 {offsets = [0, 45], sizes = [2, 1], strides = [1, 1]} : vector<2x64xf32> to vector<2x1xf32>
    %560 = vector.broadcast %559 : vector<2x1xf32> to vector<2x128xf32>
    %561 = arith.addf %558, %560 : vector<2x128xf32>
    %cst_105 = arith.constant 0.000000e+00 : f32
    %562 = vector.broadcast %cst_105 : f32 to vector<2x128xf32>
    %563 = arith.maximumf %561, %562 : vector<2x128xf32>
    %c45_106 = arith.constant 45 : index
    %564 = memref.load %arg11[%c45_106] : memref<64xf32, #tpu.memory_space<smem>>
    %565 = vector.broadcast %564 : f32 to vector<2x128xf32>
    %566 = arith.mulf %565, %563 : vector<2x128xf32>
    %567 = arith.addf %555, %566 : vector<2x128xf32>
    %c46 = arith.constant 46 : index
    %568 = memref.load %arg10[%c46] : memref<64xf32, #tpu.memory_space<smem>>
    %569 = vector.broadcast %568 : f32 to vector<2x128xf32>
    %570 = arith.mulf %8, %569 : vector<2x128xf32>
    %571 = vector.extract_strided_slice %14 {offsets = [0, 46], sizes = [2, 1], strides = [1, 1]} : vector<2x64xf32> to vector<2x1xf32>
    %572 = vector.broadcast %571 : vector<2x1xf32> to vector<2x128xf32>
    %573 = arith.addf %570, %572 : vector<2x128xf32>
    %cst_107 = arith.constant 0.000000e+00 : f32
    %574 = vector.broadcast %cst_107 : f32 to vector<2x128xf32>
    %575 = arith.maximumf %573, %574 : vector<2x128xf32>
    %c46_108 = arith.constant 46 : index
    %576 = memref.load %arg11[%c46_108] : memref<64xf32, #tpu.memory_space<smem>>
    %577 = vector.broadcast %576 : f32 to vector<2x128xf32>
    %578 = arith.mulf %577, %575 : vector<2x128xf32>
    %579 = arith.addf %567, %578 : vector<2x128xf32>
    %c47 = arith.constant 47 : index
    %580 = memref.load %arg10[%c47] : memref<64xf32, #tpu.memory_space<smem>>
    %581 = vector.broadcast %580 : f32 to vector<2x128xf32>
    %582 = arith.mulf %8, %581 : vector<2x128xf32>
    %583 = vector.extract_strided_slice %14 {offsets = [0, 47], sizes = [2, 1], strides = [1, 1]} : vector<2x64xf32> to vector<2x1xf32>
    %584 = vector.broadcast %583 : vector<2x1xf32> to vector<2x128xf32>
    %585 = arith.addf %582, %584 : vector<2x128xf32>
    %cst_109 = arith.constant 0.000000e+00 : f32
    %586 = vector.broadcast %cst_109 : f32 to vector<2x128xf32>
    %587 = arith.maximumf %585, %586 : vector<2x128xf32>
    %c47_110 = arith.constant 47 : index
    %588 = memref.load %arg11[%c47_110] : memref<64xf32, #tpu.memory_space<smem>>
    %589 = vector.broadcast %588 : f32 to vector<2x128xf32>
    %590 = arith.mulf %589, %587 : vector<2x128xf32>
    %591 = arith.addf %579, %590 : vector<2x128xf32>
    %c48 = arith.constant 48 : index
    %592 = memref.load %arg10[%c48] : memref<64xf32, #tpu.memory_space<smem>>
    %593 = vector.broadcast %592 : f32 to vector<2x128xf32>
    %594 = arith.mulf %8, %593 : vector<2x128xf32>
    %595 = vector.extract_strided_slice %14 {offsets = [0, 48], sizes = [2, 1], strides = [1, 1]} : vector<2x64xf32> to vector<2x1xf32>
    %596 = vector.broadcast %595 : vector<2x1xf32> to vector<2x128xf32>
    %597 = arith.addf %594, %596 : vector<2x128xf32>
    %cst_111 = arith.constant 0.000000e+00 : f32
    %598 = vector.broadcast %cst_111 : f32 to vector<2x128xf32>
    %599 = arith.maximumf %597, %598 : vector<2x128xf32>
    %c48_112 = arith.constant 48 : index
    %600 = memref.load %arg11[%c48_112] : memref<64xf32, #tpu.memory_space<smem>>
    %601 = vector.broadcast %600 : f32 to vector<2x128xf32>
    %602 = arith.mulf %601, %599 : vector<2x128xf32>
    %603 = arith.addf %591, %602 : vector<2x128xf32>
    %c49 = arith.constant 49 : index
    %604 = memref.load %arg10[%c49] : memref<64xf32, #tpu.memory_space<smem>>
    %605 = vector.broadcast %604 : f32 to vector<2x128xf32>
    %606 = arith.mulf %8, %605 : vector<2x128xf32>
    %607 = vector.extract_strided_slice %14 {offsets = [0, 49], sizes = [2, 1], strides = [1, 1]} : vector<2x64xf32> to vector<2x1xf32>
    %608 = vector.broadcast %607 : vector<2x1xf32> to vector<2x128xf32>
    %609 = arith.addf %606, %608 : vector<2x128xf32>
    %cst_113 = arith.constant 0.000000e+00 : f32
    %610 = vector.broadcast %cst_113 : f32 to vector<2x128xf32>
    %611 = arith.maximumf %609, %610 : vector<2x128xf32>
    %c49_114 = arith.constant 49 : index
    %612 = memref.load %arg11[%c49_114] : memref<64xf32, #tpu.memory_space<smem>>
    %613 = vector.broadcast %612 : f32 to vector<2x128xf32>
    %614 = arith.mulf %613, %611 : vector<2x128xf32>
    %615 = arith.addf %603, %614 : vector<2x128xf32>
    %c50 = arith.constant 50 : index
    %616 = memref.load %arg10[%c50] : memref<64xf32, #tpu.memory_space<smem>>
    %617 = vector.broadcast %616 : f32 to vector<2x128xf32>
    %618 = arith.mulf %8, %617 : vector<2x128xf32>
    %619 = vector.extract_strided_slice %14 {offsets = [0, 50], sizes = [2, 1], strides = [1, 1]} : vector<2x64xf32> to vector<2x1xf32>
    %620 = vector.broadcast %619 : vector<2x1xf32> to vector<2x128xf32>
    %621 = arith.addf %618, %620 : vector<2x128xf32>
    %cst_115 = arith.constant 0.000000e+00 : f32
    %622 = vector.broadcast %cst_115 : f32 to vector<2x128xf32>
    %623 = arith.maximumf %621, %622 : vector<2x128xf32>
    %c50_116 = arith.constant 50 : index
    %624 = memref.load %arg11[%c50_116] : memref<64xf32, #tpu.memory_space<smem>>
    %625 = vector.broadcast %624 : f32 to vector<2x128xf32>
    %626 = arith.mulf %625, %623 : vector<2x128xf32>
    %627 = arith.addf %615, %626 : vector<2x128xf32>
    %c51 = arith.constant 51 : index
    %628 = memref.load %arg10[%c51] : memref<64xf32, #tpu.memory_space<smem>>
    %629 = vector.broadcast %628 : f32 to vector<2x128xf32>
    %630 = arith.mulf %8, %629 : vector<2x128xf32>
    %631 = vector.extract_strided_slice %14 {offsets = [0, 51], sizes = [2, 1], strides = [1, 1]} : vector<2x64xf32> to vector<2x1xf32>
    %632 = vector.broadcast %631 : vector<2x1xf32> to vector<2x128xf32>
    %633 = arith.addf %630, %632 : vector<2x128xf32>
    %cst_117 = arith.constant 0.000000e+00 : f32
    %634 = vector.broadcast %cst_117 : f32 to vector<2x128xf32>
    %635 = arith.maximumf %633, %634 : vector<2x128xf32>
    %c51_118 = arith.constant 51 : index
    %636 = memref.load %arg11[%c51_118] : memref<64xf32, #tpu.memory_space<smem>>
    %637 = vector.broadcast %636 : f32 to vector<2x128xf32>
    %638 = arith.mulf %637, %635 : vector<2x128xf32>
    %639 = arith.addf %627, %638 : vector<2x128xf32>
    %c52 = arith.constant 52 : index
    %640 = memref.load %arg10[%c52] : memref<64xf32, #tpu.memory_space<smem>>
    %641 = vector.broadcast %640 : f32 to vector<2x128xf32>
    %642 = arith.mulf %8, %641 : vector<2x128xf32>
    %643 = vector.extract_strided_slice %14 {offsets = [0, 52], sizes = [2, 1], strides = [1, 1]} : vector<2x64xf32> to vector<2x1xf32>
    %644 = vector.broadcast %643 : vector<2x1xf32> to vector<2x128xf32>
    %645 = arith.addf %642, %644 : vector<2x128xf32>
    %cst_119 = arith.constant 0.000000e+00 : f32
    %646 = vector.broadcast %cst_119 : f32 to vector<2x128xf32>
    %647 = arith.maximumf %645, %646 : vector<2x128xf32>
    %c52_120 = arith.constant 52 : index
    %648 = memref.load %arg11[%c52_120] : memref<64xf32, #tpu.memory_space<smem>>
    %649 = vector.broadcast %648 : f32 to vector<2x128xf32>
    %650 = arith.mulf %649, %647 : vector<2x128xf32>
    %651 = arith.addf %639, %650 : vector<2x128xf32>
    %c53 = arith.constant 53 : index
    %652 = memref.load %arg10[%c53] : memref<64xf32, #tpu.memory_space<smem>>
    %653 = vector.broadcast %652 : f32 to vector<2x128xf32>
    %654 = arith.mulf %8, %653 : vector<2x128xf32>
    %655 = vector.extract_strided_slice %14 {offsets = [0, 53], sizes = [2, 1], strides = [1, 1]} : vector<2x64xf32> to vector<2x1xf32>
    %656 = vector.broadcast %655 : vector<2x1xf32> to vector<2x128xf32>
    %657 = arith.addf %654, %656 : vector<2x128xf32>
    %cst_121 = arith.constant 0.000000e+00 : f32
    %658 = vector.broadcast %cst_121 : f32 to vector<2x128xf32>
    %659 = arith.maximumf %657, %658 : vector<2x128xf32>
    %c53_122 = arith.constant 53 : index
    %660 = memref.load %arg11[%c53_122] : memref<64xf32, #tpu.memory_space<smem>>
    %661 = vector.broadcast %660 : f32 to vector<2x128xf32>
    %662 = arith.mulf %661, %659 : vector<2x128xf32>
    %663 = arith.addf %651, %662 : vector<2x128xf32>
    %c54 = arith.constant 54 : index
    %664 = memref.load %arg10[%c54] : memref<64xf32, #tpu.memory_space<smem>>
    %665 = vector.broadcast %664 : f32 to vector<2x128xf32>
    %666 = arith.mulf %8, %665 : vector<2x128xf32>
    %667 = vector.extract_strided_slice %14 {offsets = [0, 54], sizes = [2, 1], strides = [1, 1]} : vector<2x64xf32> to vector<2x1xf32>
    %668 = vector.broadcast %667 : vector<2x1xf32> to vector<2x128xf32>
    %669 = arith.addf %666, %668 : vector<2x128xf32>
    %cst_123 = arith.constant 0.000000e+00 : f32
    %670 = vector.broadcast %cst_123 : f32 to vector<2x128xf32>
    %671 = arith.maximumf %669, %670 : vector<2x128xf32>
    %c54_124 = arith.constant 54 : index
    %672 = memref.load %arg11[%c54_124] : memref<64xf32, #tpu.memory_space<smem>>
    %673 = vector.broadcast %672 : f32 to vector<2x128xf32>
    %674 = arith.mulf %673, %671 : vector<2x128xf32>
    %675 = arith.addf %663, %674 : vector<2x128xf32>
    %c55 = arith.constant 55 : index
    %676 = memref.load %arg10[%c55] : memref<64xf32, #tpu.memory_space<smem>>
    %677 = vector.broadcast %676 : f32 to vector<2x128xf32>
    %678 = arith.mulf %8, %677 : vector<2x128xf32>
    %679 = vector.extract_strided_slice %14 {offsets = [0, 55], sizes = [2, 1], strides = [1, 1]} : vector<2x64xf32> to vector<2x1xf32>
    %680 = vector.broadcast %679 : vector<2x1xf32> to vector<2x128xf32>
    %681 = arith.addf %678, %680 : vector<2x128xf32>
    %cst_125 = arith.constant 0.000000e+00 : f32
    %682 = vector.broadcast %cst_125 : f32 to vector<2x128xf32>
    %683 = arith.maximumf %681, %682 : vector<2x128xf32>
    %c55_126 = arith.constant 55 : index
    %684 = memref.load %arg11[%c55_126] : memref<64xf32, #tpu.memory_space<smem>>
    %685 = vector.broadcast %684 : f32 to vector<2x128xf32>
    %686 = arith.mulf %685, %683 : vector<2x128xf32>
    %687 = arith.addf %675, %686 : vector<2x128xf32>
    %c56 = arith.constant 56 : index
    %688 = memref.load %arg10[%c56] : memref<64xf32, #tpu.memory_space<smem>>
    %689 = vector.broadcast %688 : f32 to vector<2x128xf32>
    %690 = arith.mulf %8, %689 : vector<2x128xf32>
    %691 = vector.extract_strided_slice %14 {offsets = [0, 56], sizes = [2, 1], strides = [1, 1]} : vector<2x64xf32> to vector<2x1xf32>
    %692 = vector.broadcast %691 : vector<2x1xf32> to vector<2x128xf32>
    %693 = arith.addf %690, %692 : vector<2x128xf32>
    %cst_127 = arith.constant 0.000000e+00 : f32
    %694 = vector.broadcast %cst_127 : f32 to vector<2x128xf32>
    %695 = arith.maximumf %693, %694 : vector<2x128xf32>
    %c56_128 = arith.constant 56 : index
    %696 = memref.load %arg11[%c56_128] : memref<64xf32, #tpu.memory_space<smem>>
    %697 = vector.broadcast %696 : f32 to vector<2x128xf32>
    %698 = arith.mulf %697, %695 : vector<2x128xf32>
    %699 = arith.addf %687, %698 : vector<2x128xf32>
    %c57 = arith.constant 57 : index
    %700 = memref.load %arg10[%c57] : memref<64xf32, #tpu.memory_space<smem>>
    %701 = vector.broadcast %700 : f32 to vector<2x128xf32>
    %702 = arith.mulf %8, %701 : vector<2x128xf32>
    %703 = vector.extract_strided_slice %14 {offsets = [0, 57], sizes = [2, 1], strides = [1, 1]} : vector<2x64xf32> to vector<2x1xf32>
    %704 = vector.broadcast %703 : vector<2x1xf32> to vector<2x128xf32>
    %705 = arith.addf %702, %704 : vector<2x128xf32>
    %cst_129 = arith.constant 0.000000e+00 : f32
    %706 = vector.broadcast %cst_129 : f32 to vector<2x128xf32>
    %707 = arith.maximumf %705, %706 : vector<2x128xf32>
    %c57_130 = arith.constant 57 : index
    %708 = memref.load %arg11[%c57_130] : memref<64xf32, #tpu.memory_space<smem>>
    %709 = vector.broadcast %708 : f32 to vector<2x128xf32>
    %710 = arith.mulf %709, %707 : vector<2x128xf32>
    %711 = arith.addf %699, %710 : vector<2x128xf32>
    %c58 = arith.constant 58 : index
    %712 = memref.load %arg10[%c58] : memref<64xf32, #tpu.memory_space<smem>>
    %713 = vector.broadcast %712 : f32 to vector<2x128xf32>
    %714 = arith.mulf %8, %713 : vector<2x128xf32>
    %715 = vector.extract_strided_slice %14 {offsets = [0, 58], sizes = [2, 1], strides = [1, 1]} : vector<2x64xf32> to vector<2x1xf32>
    %716 = vector.broadcast %715 : vector<2x1xf32> to vector<2x128xf32>
    %717 = arith.addf %714, %716 : vector<2x128xf32>
    %cst_131 = arith.constant 0.000000e+00 : f32
    %718 = vector.broadcast %cst_131 : f32 to vector<2x128xf32>
    %719 = arith.maximumf %717, %718 : vector<2x128xf32>
    %c58_132 = arith.constant 58 : index
    %720 = memref.load %arg11[%c58_132] : memref<64xf32, #tpu.memory_space<smem>>
    %721 = vector.broadcast %720 : f32 to vector<2x128xf32>
    %722 = arith.mulf %721, %719 : vector<2x128xf32>
    %723 = arith.addf %711, %722 : vector<2x128xf32>
    %c59 = arith.constant 59 : index
    %724 = memref.load %arg10[%c59] : memref<64xf32, #tpu.memory_space<smem>>
    %725 = vector.broadcast %724 : f32 to vector<2x128xf32>
    %726 = arith.mulf %8, %725 : vector<2x128xf32>
    %727 = vector.extract_strided_slice %14 {offsets = [0, 59], sizes = [2, 1], strides = [1, 1]} : vector<2x64xf32> to vector<2x1xf32>
    %728 = vector.broadcast %727 : vector<2x1xf32> to vector<2x128xf32>
    %729 = arith.addf %726, %728 : vector<2x128xf32>
    %cst_133 = arith.constant 0.000000e+00 : f32
    %730 = vector.broadcast %cst_133 : f32 to vector<2x128xf32>
    %731 = arith.maximumf %729, %730 : vector<2x128xf32>
    %c59_134 = arith.constant 59 : index
    %732 = memref.load %arg11[%c59_134] : memref<64xf32, #tpu.memory_space<smem>>
    %733 = vector.broadcast %732 : f32 to vector<2x128xf32>
    %734 = arith.mulf %733, %731 : vector<2x128xf32>
    %735 = arith.addf %723, %734 : vector<2x128xf32>
    %c60 = arith.constant 60 : index
    %736 = memref.load %arg10[%c60] : memref<64xf32, #tpu.memory_space<smem>>
    %737 = vector.broadcast %736 : f32 to vector<2x128xf32>
    %738 = arith.mulf %8, %737 : vector<2x128xf32>
    %739 = vector.extract_strided_slice %14 {offsets = [0, 60], sizes = [2, 1], strides = [1, 1]} : vector<2x64xf32> to vector<2x1xf32>
    %740 = vector.broadcast %739 : vector<2x1xf32> to vector<2x128xf32>
    %741 = arith.addf %738, %740 : vector<2x128xf32>
    %cst_135 = arith.constant 0.000000e+00 : f32
    %742 = vector.broadcast %cst_135 : f32 to vector<2x128xf32>
    %743 = arith.maximumf %741, %742 : vector<2x128xf32>
    %c60_136 = arith.constant 60 : index
    %744 = memref.load %arg11[%c60_136] : memref<64xf32, #tpu.memory_space<smem>>
    %745 = vector.broadcast %744 : f32 to vector<2x128xf32>
    %746 = arith.mulf %745, %743 : vector<2x128xf32>
    %747 = arith.addf %735, %746 : vector<2x128xf32>
    %c61 = arith.constant 61 : index
    %748 = memref.load %arg10[%c61] : memref<64xf32, #tpu.memory_space<smem>>
    %749 = vector.broadcast %748 : f32 to vector<2x128xf32>
    %750 = arith.mulf %8, %749 : vector<2x128xf32>
    %751 = vector.extract_strided_slice %14 {offsets = [0, 61], sizes = [2, 1], strides = [1, 1]} : vector<2x64xf32> to vector<2x1xf32>
    %752 = vector.broadcast %751 : vector<2x1xf32> to vector<2x128xf32>
    %753 = arith.addf %750, %752 : vector<2x128xf32>
    %cst_137 = arith.constant 0.000000e+00 : f32
    %754 = vector.broadcast %cst_137 : f32 to vector<2x128xf32>
    %755 = arith.maximumf %753, %754 : vector<2x128xf32>
    %c61_138 = arith.constant 61 : index
    %756 = memref.load %arg11[%c61_138] : memref<64xf32, #tpu.memory_space<smem>>
    %757 = vector.broadcast %756 : f32 to vector<2x128xf32>
    %758 = arith.mulf %757, %755 : vector<2x128xf32>
    %759 = arith.addf %747, %758 : vector<2x128xf32>
    %c62 = arith.constant 62 : index
    %760 = memref.load %arg10[%c62] : memref<64xf32, #tpu.memory_space<smem>>
    %761 = vector.broadcast %760 : f32 to vector<2x128xf32>
    %762 = arith.mulf %8, %761 : vector<2x128xf32>
    %763 = vector.extract_strided_slice %14 {offsets = [0, 62], sizes = [2, 1], strides = [1, 1]} : vector<2x64xf32> to vector<2x1xf32>
    %764 = vector.broadcast %763 : vector<2x1xf32> to vector<2x128xf32>
    %765 = arith.addf %762, %764 : vector<2x128xf32>
    %cst_139 = arith.constant 0.000000e+00 : f32
    %766 = vector.broadcast %cst_139 : f32 to vector<2x128xf32>
    %767 = arith.maximumf %765, %766 : vector<2x128xf32>
    %c62_140 = arith.constant 62 : index
    %768 = memref.load %arg11[%c62_140] : memref<64xf32, #tpu.memory_space<smem>>
    %769 = vector.broadcast %768 : f32 to vector<2x128xf32>
    %770 = arith.mulf %769, %767 : vector<2x128xf32>
    %771 = arith.addf %759, %770 : vector<2x128xf32>
    %c63 = arith.constant 63 : index
    %772 = memref.load %arg10[%c63] : memref<64xf32, #tpu.memory_space<smem>>
    %773 = vector.broadcast %772 : f32 to vector<2x128xf32>
    %774 = arith.mulf %8, %773 : vector<2x128xf32>
    %775 = vector.extract_strided_slice %14 {offsets = [0, 63], sizes = [2, 1], strides = [1, 1]} : vector<2x64xf32> to vector<2x1xf32>
    %776 = vector.broadcast %775 : vector<2x1xf32> to vector<2x128xf32>
    %777 = arith.addf %774, %776 : vector<2x128xf32>
    %cst_141 = arith.constant 0.000000e+00 : f32
    %778 = vector.broadcast %cst_141 : f32 to vector<2x128xf32>
    %779 = arith.maximumf %777, %778 : vector<2x128xf32>
    %c63_142 = arith.constant 63 : index
    %780 = memref.load %arg11[%c63_142] : memref<64xf32, #tpu.memory_space<smem>>
    %781 = vector.broadcast %780 : f32 to vector<2x128xf32>
    %782 = arith.mulf %781, %779 : vector<2x128xf32>
    %783 = arith.addf %771, %782 : vector<2x128xf32>
    %c0_143 = arith.constant 0 : index
    %784 = memref.load %arg12[%c0_143] : memref<1xf32, #tpu.memory_space<smem>>
    %785 = vector.broadcast %784 : f32 to vector<2x128xf32>
    %786 = arith.addf %783, %785 : vector<2x128xf32>
    %787 = arith.subf %1, %786 : vector<2x128xf32>
    %788 = arith.mulf %787, %787 : vector<2x128xf32>
    %789 = vector.shape_cast %788 : vector<2x128xf32> to vector<1x2x128xf32>
    %cst_144 = arith.constant dense<0.000000e+00> : vector<1xf32>
    %790 = vector.multi_reduction <add>, %789, %cst_144 [1, 2] : vector<1x2x128xf32> to vector<1xf32>
    %791 = vector.shape_cast %790 : vector<1xf32> to vector<1x1x1xf32>
    %792 = vector.extract %791[0, 0, 0] : f32 from vector<1x1x1xf32>
    %cst_145 = arith.constant 3.906250e-03 : f32
    %793 = arith.mulf %792, %cst_145 : f32
    %794 = vector.broadcast %3 : vector<2x1xf32> to vector<2x128xf32>
    %795 = arith.mulf %794, %786 : vector<2x128xf32>
    %796 = arith.subf %8, %795 : vector<2x128xf32>
    %c0_146 = arith.constant 0 : index
    %c0_147 = arith.constant 0 : index
    %797 = vector.load %arg6[%c0_146, %c0_147] : memref<2x1xf32, #tpu.memory_space<vmem>>, vector<2x1xf32>
    %798 = vector.broadcast %797 : vector<2x1xf32> to vector<2x128xf32>
    %799 = arith.mulf %796, %798 : vector<2x128xf32>
    %800 = arith.subf %799, %0 : vector<2x128xf32>
    %801 = arith.mulf %800, %800 : vector<2x128xf32>
    %cst_148 = arith.constant dense<0.000000e+00> : vector<2xf32>
    %802 = vector.multi_reduction <add>, %801, %cst_148 [1] : vector<2x128xf32> to vector<2xf32>
    %803 = vector.shape_cast %802 : vector<2xf32> to vector<2x1xf32>
    %cst_149 = arith.constant 7.812500e-03 : f32
    %804 = vector.broadcast %cst_149 : f32 to vector<2x1xf32>
    %805 = arith.mulf %803, %804 : vector<2x1xf32>
    %c0_150 = arith.constant 0 : index
    %c0_151 = arith.constant 0 : index
    %806 = vector.load %arg7[%c0_150, %c0_151] : memref<2x1xf32, #tpu.memory_space<vmem>>, vector<2x1xf32>
    %807 = arith.mulf %806, %805 : vector<2x1xf32>
    %808 = vector.shape_cast %807 : vector<2x1xf32> to vector<1x2x1xf32>
    %cst_152 = arith.constant dense<0.000000e+00> : vector<1xf32>
    %809 = vector.multi_reduction <add>, %808, %cst_152 [1, 2] : vector<1x2x1xf32> to vector<1xf32>
    %810 = vector.shape_cast %809 : vector<1xf32> to vector<1x1x1xf32>
    %811 = vector.extract %810[0, 0, 0] : f32 from vector<1x1x1xf32>
    %cst_153 = arith.constant 5.000000e-01 : f32
    %812 = arith.mulf %811, %cst_153 : f32
    %813 = arith.addf %793, %812 : f32
    %814 = vector.broadcast %813 : f32 to vector<1x1xf32>
    %c0_154 = arith.constant 0 : index
    %c0_155 = arith.constant 0 : index
    %815 = vector.load %arg13[%c0_154, %c0_155] : memref<1x1xf32, #tpu.memory_space<vmem>>, vector<1x1xf32>
    tpu.vector_store %arg13[%c0_154, %c0_155], %814 {strides = array<i32>} : memref<1x1xf32, #tpu.memory_space<vmem>>, vector<1x1xf32>,
    return
  }
  func.func @transform_0(%arg0: i32) -> (i32, i32) {
    %c0_i32 = arith.constant 0 : i32
    %c0_i32_0 = arith.constant 0 : i32
    %c0_i32_1 = arith.constant 0 : i32
    return %c0_i32, %c0_i32_0 : i32, i32
  }
  func.func @transform_1(%arg0: i32) -> (i32, i32) {
    %c0_i32 = arith.constant 0 : i32
    %c0_i32_0 = arith.constant 0 : i32
    %c0_i32_1 = arith.constant 0 : i32
    return %c0_i32, %c0_i32_0 : i32, i32
  }
  func.func @transform_2(%arg0: i32) -> (i32, i32) {
    %c0_i32 = arith.constant 0 : i32
    %c0_i32_0 = arith.constant 0 : i32
    %c0_i32_1 = arith.constant 0 : i32
    return %c0_i32, %c0_i32_0 : i32, i32
  }
  func.func @transform_3(%arg0: i32) -> (i32, i32) {
    %c0_i32 = arith.constant 0 : i32
    %c0_i32_0 = arith.constant 0 : i32
    %c0_i32_1 = arith.constant 0 : i32
    return %c0_i32, %c0_i32_0 : i32, i32
  }
  func.func @transform_4(%arg0: i32) -> (i32, i32) {
    %c0_i32 = arith.constant 0 : i32
    %c0_i32_0 = arith.constant 0 : i32
    %c0_i32_1 = arith.constant 0 : i32
    return %c0_i32, %c0_i32_0 : i32, i32
  }
  func.func @transform_5(%arg0: i32) -> (i32, i32) {
    %c0_i32 = arith.constant 0 : i32
    %c0_i32_0 = arith.constant 0 : i32
    %c0_i32_1 = arith.constant 0 : i32
    return %c0_i32, %c0_i32_0 : i32, i32
  }
  func.func @transform_6(%arg0: i32) -> (i32, i32) {
    %c0_i32 = arith.constant 0 : i32
    %c0_i32_0 = arith.constant 0 : i32
    %c0_i32_1 = arith.constant 0 : i32
    return %c0_i32, %c0_i32_0 : i32, i32
  }
  func.func @transform_7(%arg0: i32) -> (i32, i32) {
    %c0_i32 = arith.constant 0 : i32
    %c0_i32_0 = arith.constant 0 : i32
    %c0_i32_1 = arith.constant 0 : i32
    return %c0_i32, %c0_i32_0 : i32, i32
  }
  func.func @transform_8(%arg0: i32) -> (i32, i32) {
    %c0_i32 = arith.constant 0 : i32
    %c0_i32_0 = arith.constant 0 : i32
    %c0_i32_1 = arith.constant 0 : i32
    return %c0_i32, %c0_i32_0 : i32, i32
  }
  func.func @transform_9(%arg0: i32) -> i32 {
    %c0_i32 = arith.constant 0 : i32
    %c0_i32_0 = arith.constant 0 : i32
    return %c0_i32 : i32
  }
  func.func @transform_10(%arg0: i32) -> i32 {
    %c0_i32 = arith.constant 0 : i32
    %c0_i32_0 = arith.constant 0 : i32
    return %c0_i32 : i32
  }
  func.func @transform_11(%arg0: i32) -> i32 {
    %c0_i32 = arith.constant 0 : i32
    %c0_i32_0 = arith.constant 0 : i32
    return %c0_i32 : i32
  }
  func.func @transform_12(%arg0: i32) -> (i32, i32) {
    %c0_i32 = arith.constant 0 : i32
    %c0_i32_0 = arith.constant 0 : i32
    %c0_i32_1 = arith.constant 0 : i32
    return %c0_i32, %c0_i32_0 : i32, i32
  }
}

</mosaic_0001>

<bundles_post_ra>
// kernel: calc_loss.1
= control target key start
LH: loop header
LB: loop body
LE: loop exit
PB: predicated region body
PF: predicated region fallthrough
CT: control target
= control target key end

     0   :  { %18 = vsyncpa [#allocation5], 0  ;;  %s2185_s0 = inlined_call_operand.vmem [shape: f32[2,128], index: 0, kind: input, shape index: {}]   ;;  %s2186_s1 = inlined_call_operand.vmem [shape: f32[2,128], index: 1, kind: input, shape index: {}]   ;;  %s2187_s2 = inlined_call_operand.vmem [shape: f32[2,96], index: 2, kind: input, shape index: {}]   ;;  %s2188_s3 = inlined_call_operand.vmem [shape: f32[2,1], index: 3, kind: input, shape index: {}]   ;;  %s2189_s4 = inlined_call_operand.vmem [shape: f32[2,1], index: 4, kind: input, shape index: {}]   ;;  %s2190_s5 = inlined_call_operand.vmem [shape: f32[2,1], index: 5, kind: input, shape index: {}]   ;;  %s2191_s6 = inlined_call_operand.vmem [shape: f32[2,1], index: 6, kind: input, shape index: {}]   ;;  %s2192_s7 = inlined_call_operand.vmem [shape: f32[96,64], index: 7, kind: input, shape index: {}]   ;;  %s2193_s8 = inlined_call_operand.vmem [shape: f32[1,64], index: 8, kind: input, shape index: {}]   ;;  %s2194_s9 = inlined_call_operand.vmem [shape: f32[64], index: 9, kind: input, shape index: {}]   ;;  %s2195_s10 = inlined_call_operand.vmem [shape: f32[64], index: 10, kind: input, shape index: {}]   ;;  %s2196_s11 = inlined_call_operand.<no memory space> [shape: f32[1], index: 11, kind: input, shape index: {}]   ;;  %s2197_s12 = inlined_call_operand.hbm [shape: f32[1,1], index: 12, kind: output, shape index: {}]  }
   0x1   :  { %19 = vsyncpa [#allocation7], 0 }
   0x2   :  { %20 = vsyncpa [#allocation4], 0  ;;  %s45_s23 = sshll.u32 %s2194_s9, 4  ;;  %s55_s26 = sshll.u32 %s2195_s10, 4  ;;  %s46_s23 = int_to_ptr.vmem [resolvable:$true] %s45_s23  ;;  %s56_s26 = int_to_ptr.vmem [resolvable:$true] %s55_s26 }
   0x3   :  { %s1407_s27 = scalar_lea.vmem %s46_s23, 16  ;;  %p1412_p1 = scmp.lt.s32.totalorder %s46_s23, %s46_s23 }
   0x4   :  { %p1408_p0 = scmp.ne.s32.totalorder %s46_s23, %s1407_s27  ;;  %p1413_p2 = scmp.lt.s32.totalorder %s1407_s27, %s1407_s27 }
   0x6   :  { %p1414_p3 = por %p1413_p2, %p1412_p1 }
   0x8   :  { %p1415_p4 = pnand %p1414_p3, %p1408_p0 }
   0xa   :  { %1418 = shalt.err (!%p1415_p4)
}
   0xb   :  { %s1459_s28 = smov [#allocation3]   ;;  %s1419_s29 = scalar_lea.vmem %s56_s26, 16 }
   0xc   :  { %48 = dma.vmem_to_smem %s46_s23, 16, %s1459_s28, [#allocation5]  }
   0xd   :  { %p1420_p5 = scmp.ne.s32.totalorder %s56_s26, %s1419_s29  ;;  %p1424_p6 = scmp.lt.s32.totalorder %s56_s26, %s56_s26 }
   0xe   :  { %p1425_p7 = scmp.lt.s32.totalorder %s1419_s29, %s1419_s29 }
  0x10   :  { %p1426_p8 = por %p1425_p7, %p1424_p6 }
  0x12   :  { %p1427_p9 = pnand %p1426_p8, %p1420_p5 }
  0x14   :  { %1430 = shalt.err (!%p1427_p9)
}
  0x15   :  { %s1460_s9 = smov [#allocation6]  }
  0x16   :  { %58 = dma.vmem_to_smem %s56_s26, 16, %s1460_s9, [#allocation7]  }
  0x17   :  { %1453 = dma.done.wait [#allocation5], 16  }
  0x18   :  { %1454 = vsyncadd [#allocation5], 4294967280 }
  0x19   :  { %1455 = dma.done.wait [#allocation7], 16  }
  0x1a   :  { %1456 = vsyncadd [#allocation7], 4294967280 }
  0x1b   :  { %67 = sfence }
  0x1c   :  { %v86_v0 = vld [vmem:[%s2192_s7] sm:$0xff]  ;;  %v87_v1 = vld [vmem:[%s2192_s7 + $0x8] sm:$0xff]  ;;  %v88_v2 = vld [vmem:[%s2192_s7 + $0x10] sm:$0xff]  ;;  %v1461_v3 = vmov 0.0|0.0   ;;  %vm1462_vm0 = vmmov 0   ;;  %v1463_v6 = vmov 0.0  }
  0x1d   :  { %1246 = vmatprep.subr.bf16.mxu0 %v1461_v3  ;;  %v1247_v4 = vpack.c.bf16 %v87_v1, %v86_v0  ;;  %v89_v5 = vld [vmem:[%s2192_s7 + $0x18] sm:$0xff]  ;;  %1243 = vmatprep.mubr.msk.f32.mxu0 %vm1462_vm0, %v1463_v6  ;;  %v1464_v7 = vmov 0   ;;  %v90_v9 = vld [vmem:[%s2192_s7 + $0x20] sm:$0xff]  ;;  %v91_v10 = vld [vmem:[%s2192_s7 + $0x28] sm:$0xff]  ;;  %vm105_vm1 = vcmask 785408   ;;  %v1465_v24 = vmov 2  }
  0x1e   :  { %1338 = vset.pattern.permute.xlu0 %v1464_v7  ;;  %1339 = vset.pattern.permute.xlu1 %v1464_v7  ;;  %v1250_v8 = vpack.c.bf16 %v89_v5, %v88_v2  ;;  %v70_v11 = vld [vmem:[%s2188_s3] sm:$0x3]  ;;  %v1253_v13 = vpack.c.bf16 %v91_v10, %v90_v9  ;;  %v92_v14 = vld [vmem:[%s2192_s7 + $0x30] sm:$0xff]  ;;  %v93_v15 = vld [vmem:[%s2192_s7 + $0x38] sm:$0xff]  ;;  %v1466_v29 = vmov 1   ;;  %v1467_v30 = vmov 5  }
  0x1f   :  { %1248 = vmatpush3.bf16.msra.mxu0 %v1247_v4  ;;  %74 = vperm.xlu0 %1338, %v70_v11   ;;  %v71_v12 = vld [vmem:[%s2189_s4] sm:$0x3]  ;;  %v1256_v16 = vpack.c.bf16 %v93_v15, %v92_v14  ;;  %v95_v18 = vld [vmem:[%s2192_s7 + $0x48] sm:$0xff]  ;;  %v96_v20 = vld [vmem:[%s2192_s7 + $0x50] sm:$0xff]  ;;  %v1468_v31 = vmov 3   ;;  %v1469_v32 = vmov 8  }
  0x20   :  { %1249 = vmatprep.subr.bf16.mxu0 %v1461_v3  ;;  %v94_v17 = vld [vmem:[%s2192_s7 + $0x40] sm:$0xff]  ;;  %v97_v21 = vld [vmem:[%s2192_s7 + $0x58] sm:$0xff]  ;;  %v1470_v33 = vmov 4   ;;  %v1471_v34 = vmov 11   ;;  %v1472_v35 = vmov 6   ;;  %v1473_v36 = vmov 14  }
  0x21   :  { %v1259_v19 = vpack.c.bf16 %v95_v18, %v94_v17  ;;  %v1262_v22 = vpack.c.bf16 %v97_v21, %v96_v20  ;;  %v85_v23 = vld [vmem:[%s2187_s2] sm:$0x3]  ;;  %v1474_v37 = vmov 7   ;;  %v1475_v38 = vmov 17   ;;  %s179_s22 = sld [smem:[#allocation3]]  ;;  %s1082_s23 = sld [smem:[#allocation3 + $0x2]] }
  0x22   :  { %v1078_v25 = vld [vmem:[%s2193_s8] ss:$0 sm:$0xff]  ;;  %v1476_v39 = vmov 9   ;;  %v1477_v40 = vmov 20   ;;  %v1478_v41 = vmov 10   ;;  %v1479_v42 = vmov 23  }
  0x23   :  { %1251 = vmatpush3.bf16.msra.mxu0 %v1250_v8  ;;  %80 = vperm.xlu0 %1338, %v71_v12   ;;  %v1480_v43 = vmov 12   ;;  %v1481_v44 = vmov 26   ;;  %v1482_v45 = vmov 13   ;;  %v1483_v46 = vmov 29   ;;  %v68_v10 = vld [vmem:[%s2185_s0] sm:$0x3] }
  0x24   :  { %1252 = vmatprep.subr.bf16.mxu0 %v1461_v3  ;;  %v1484_v47 = vmov 15   ;;  %v1485_v48 = vmov 32   ;;  %v1486_v49 = vmov 16   ;;  %v1487_v50 = vmov 35   ;;  %v69_v12 = vld [vmem:[%s2186_s1] sm:$0x3] }
  0x25   :  { %v1488_v51 = vmov 18   ;;  %v1489_v52 = vmov 38   ;;  %v1490_v53 = vmov 19   ;;  %v1491_v54 = vmov 41   ;;  %s1080_s24 = sld [smem:[#allocation3 + $0x1]]  ;;  %s1710_s25 = sld [smem:[#allocation3 + $0x3]] }
  0x26   :  { %v1492_v55 = vmov 21   ;;  %v1493_v56 = vmov 44   ;;  %v1494_v57 = vmov 22   ;;  %v1495_v58 = vmov 47   ;;  %s1714_s26 = sld [smem:[#allocation6]]  ;;  %s1716_s27 = sld [smem:[#allocation6 + $0x1]] }
  0x27   :  { %1254 = vmatpush3.bf16.msra.mxu0 %v1253_v13  ;;  %1341 = vset.pattern.permute.xlu0 %v1465_v24  ;;  %v1496_v59 = vmov 24   ;;  %v1497_v60 = vmov 50   ;;  %v1498_v61 = vmov 25   ;;  %v1499_v62 = vmov 53   ;;  %s1718_s28 = sld [smem:[#allocation3 + $0x5]]  ;;  %s1720_s29 = sld [smem:[#allocation3 + $0x4]] }
  0x28   :  { %1255 = vmatprep.subr.bf16.mxu0 %v1461_v3  ;;  %v1500_v63 = vmov 27   ;;  %v1501_v0 = vmov 56   ;;  %v1502_v1 = vmov 28   ;;  %v1503_v2 = vmov 59   ;;  %s1724_s9 = sld [smem:[#allocation6 + $0x2]]  ;;  %s1728_s3 = sld [smem:[#allocation6 + $0x3]] }
  0x29   :  { %v1505_v4 = vmov 62   ;;  %v1506_v5 = vmov 31   ;;  %v1507_v8 = vmov 33   ;;  %v1508_v9 = vmov 34   ;;  %s1730_s10 = sld [smem:[#allocation3 + $0x6]]  ;;  %s1738_s4 = sld [smem:[#allocation6 + $0x4]] }
  0x2a   :  { %v1509_v15 = vmov 36   ;;  %v180_v17 = vstv %s179_s22  ;;  %v1510_v18 = vmov 37   ;;  %v207_v20 = vstv %s1082_s23  ;;  %s1741_s30 = sld [smem:[#allocation3 + $0x8]]  ;;  %s1743_s13 = sld [smem:[#allocation3 + $0x7]] }
  0x2b   :  { %1257 = vmatpush3.bf16.msra.mxu0 %v1256_v16  ;;  %v194_v21 = vstv %s1080_s24  ;;  %s1747_s14 = sld [smem:[#allocation6 + $0x5]]  ;;  %s1752_s15 = sld [smem:[#allocation6 + $0x6]]  ;;  %vm1017_vm2 = vcmask 1041408   ;;  %vm1046_vm3 = vcmask 1024   ;;  %vm1060_vm4 = vcmask 0  }
  0x2c   :  { %1258 = vmatprep.subr.bf16.mxu0 %v1461_v3  ;;  %s1754_s16 = sld [smem:[#allocation3 + $0x9]]  ;;  %s1761_s17 = sld [smem:[#allocation6 + $0x7]] }
  0x2d   :  { %s1764_s18 = sld [smem:[#allocation3 + $0xb]]  ;;  %s1766_s19 = sld [smem:[#allocation3 + $0xa]] }
  0x2e   :  { %s1770_s20 = sld [smem:[#allocation6 + $0x8]]  ;;  %s1775_s2 = sld [smem:[#allocation6 + $0x9]] }
  0x2f   :  { %1260 = vmatpush3.bf16.msra.mxu0 %v1259_v19  ;;  %s1777_s7 = sld [smem:[#allocation3 + $0xc]]  ;;  %s1784_s8 = sld [smem:[#allocation6 + $0xa]] }
  0x30   :  { %1261 = vmatprep.subr.bf16.mxu0 %v1461_v3  ;;  %v1504_v3 = vmov 30   ;;  %s1787_s21 = sld [smem:[#allocation3 + $0xe]]  ;;  %s1789_s22 = sld [smem:[#allocation3 + $0xd]] }
  0x31   :  { %s1793_s23 = sld [smem:[#allocation6 + $0xb]]  ;;  %s1798_s24 = sld [smem:[#allocation6 + $0xc]] }
  0x33   :  { %1263 = vmatpush3.bf16.msra.mxu0 %v1262_v22 }
  0x36   :  { %1244 = vmatmul.mubr.msk.f32.vlgmr.msra.gmra.mrb[0].mxu0 %vm105_vm1, %v85_v23 }
  0x9e   :  { %v75_v6 = vpop.permute.xlu0 %74 }
  0x9f   :  { %v77_v13 = vmul.f32 %v75_v6, %v68_v10 }
  0xa2   :  { %v1700_v11 = vpop.permute.xlu0 %80 }
  0xa3   :  { %v83_v14 = vmul.f32 %v1700_v11, %v69_v12 }
  0xa5   :  { %v1708_v16 = vadd.f32 %v83_v14, %v77_v13  ;;  %v1515_v13 = vmov 45  }
  0xa7   :  { %v181_v19 = vmul.f32 %v180_v17, %v1708_v16  ;;  %v208_v24 = vmul.f32 %v207_v20, %v1708_v16  ;;  %v268_v17 = vstv %s1752_s15  ;;  %v298_v20 = vstv %s1754_s16  ;;  %s1846_s15 = sld [smem:[#allocation3 + $0x15]]  ;;  %s1853_s16 = sld [smem:[#allocation6 + $0x13]] }
 0x109   :  { %v175_v26 = vpop.f32.mrb[0].mxu0 }
 0x10a   :  { %v1650_v27 = vadd.f32 %v1078_v25, %v175_v26  ;;  %v1245_v28 = vpop.f32.mrb[1].mxu0  ;;  %v1511_v25 = vmov 39   ;;  %v195_v26 = vmul.f32 %v194_v21, %v1708_v16 }
 0x10c   :  { %184 = vperm.xlu1 %1339, %v1650_v27   ;;  %210 = vperm.xlu0 %1341, %v1650_v27  }
 0x110   :  { %1340 = vset.pattern.permute.xlu1 %v1466_v29  ;;  %1344 = vset.pattern.permute.xlu0 %v1467_v30  ;;  %v220_v29 = vstv %s1710_s25  ;;  %s1800_s25 = sld [smem:[#allocation3 + $0xf]] }
 0x111   :  { %197 = vperm.xlu1 %1340, %v1650_v27   ;;  %249 = vperm.xlu0 %1344, %v1650_v27  }
 0x115   :  { %1342 = vset.pattern.permute.xlu1 %v1468_v31  ;;  %1347 = vset.pattern.permute.xlu0 %v1469_v32 }
 0x116   :  { %223 = vperm.xlu1 %1342, %v1650_v27   ;;  %288 = vperm.xlu0 %1347, %v1650_v27  }
 0x11a   :  { %1343 = vset.pattern.permute.xlu1 %v1470_v33  ;;  %1350 = vset.pattern.permute.xlu0 %v1471_v34  ;;  %v190_v34 = vstv %s1714_s26  ;;  %s1807_s26 = sld [smem:[#allocation6 + $0xd]] }
 0x11b   :  { %236 = vperm.xlu1 %1343, %v1650_v27   ;;  %327 = vperm.xlu0 %1350, %v1650_v27  }
 0x11f   :  { %1345 = vset.pattern.permute.xlu1 %v1472_v35  ;;  %1353 = vset.pattern.permute.xlu0 %v1473_v36  ;;  %v203_v35 = vstv %s1716_s27  ;;  %v1512_v36 = vmov 40   ;;  %s1810_s27 = sld [smem:[#allocation3 + $0x11]] }
 0x120   :  { %262 = vperm.xlu1 %1345, %v1650_v27   ;;  %366 = vperm.xlu0 %1353, %v1650_v27  }
 0x124   :  { %1346 = vset.pattern.permute.xlu1 %v1474_v37  ;;  %1356 = vset.pattern.permute.xlu0 %v1475_v38  ;;  %v221_v37 = vmul.f32 %v220_v29, %v1708_v16  ;;  %v299_v29 = vmul.f32 %v298_v20, %v1708_v16 }
 0x125   :  { %275 = vperm.xlu1 %1346, %v1650_v27   ;;  %405 = vperm.xlu0 %1356, %v1650_v27  }
 0x129   :  { %1348 = vset.pattern.permute.xlu1 %v1476_v39  ;;  %1359 = vset.pattern.permute.xlu0 %v1477_v40  ;;  %v246_v39 = vstv %s1718_s28  ;;  %v233_v40 = vstv %s1720_s29  ;;  %s1812_s28 = sld [smem:[#allocation3 + $0x10]]  ;;  %s1816_s29 = sld [smem:[#allocation6 + $0xe]] }
 0x12a   :  { %301 = vperm.xlu1 %1348, %v1650_v27   ;;  %444 = vperm.xlu0 %1359, %v1650_v27  }
 0x12e   :  { %1349 = vset.pattern.permute.xlu1 %v1478_v41  ;;  %1362 = vset.pattern.permute.xlu0 %v1479_v42 }
 0x12f   :  { %314 = vperm.xlu1 %1349, %v1650_v27   ;;  %483 = vperm.xlu0 %1362, %v1650_v27  }
 0x133   :  { %1351 = vset.pattern.permute.xlu1 %v1480_v43  ;;  %1365 = vset.pattern.permute.xlu0 %v1481_v44 }
 0x134   :  { %340 = vperm.xlu1 %1351, %v1650_v27   ;;  %522 = vperm.xlu0 %1365, %v1650_v27  }
 0x138   :  { %1352 = vset.pattern.permute.xlu1 %v1482_v45  ;;  %1368 = vset.pattern.permute.xlu0 %v1483_v46  ;;  %v216_v45 = vstv %s1724_s9  ;;  %s1821_s9 = sld [smem:[#allocation6 + $0xf]] }
 0x139   :  { %353 = vperm.xlu1 %1352, %v1650_v27   ;;  %561 = vperm.xlu0 %1368, %v1650_v27  }
 0x13d   :  { %1354 = vset.pattern.permute.xlu1 %v1484_v47  ;;  %1371 = vset.pattern.permute.xlu0 %v1485_v48  ;;  %v247_v48 = vmul.f32 %v246_v39, %v1708_v16 }
 0x13e   :  { %379 = vperm.xlu1 %1354, %v1650_v27   ;;  %600 = vperm.xlu0 %1371, %v1650_v27  }
 0x142   :  { %1355 = vset.pattern.permute.xlu1 %v1486_v49  ;;  %1374 = vset.pattern.permute.xlu0 %v1487_v50  ;;  %v1513_v49 = vmov 42   ;;  %v234_v50 = vmul.f32 %v233_v40, %v1708_v16 }
 0x143   :  { %392 = vperm.xlu1 %1355, %v1650_v27   ;;  %639 = vperm.xlu0 %1374, %v1650_v27  }
 0x147   :  { %1357 = vset.pattern.permute.xlu1 %v1488_v51  ;;  %1377 = vset.pattern.permute.xlu0 %v1489_v52  ;;  %v229_v52 = vstv %s1728_s3  ;;  %s1823_s3 = sld [smem:[#allocation3 + $0x12]] }
 0x148   :  { %418 = vperm.xlu1 %1357, %v1650_v27   ;;  %678 = vperm.xlu0 %1377, %v1650_v27  }
 0x14c   :  { %1358 = vset.pattern.permute.xlu1 %v1490_v53  ;;  %1380 = vset.pattern.permute.xlu0 %v1491_v54 }
 0x14d   :  { %431 = vperm.xlu1 %1358, %v1650_v27   ;;  %717 = vperm.xlu0 %1380, %v1650_v27  }
 0x151   :  { %1360 = vset.pattern.permute.xlu1 %v1492_v55  ;;  %1383 = vset.pattern.permute.xlu0 %v1493_v56  ;;  %v259_v55 = vstv %s1730_s10  ;;  %s1830_s10 = sld [smem:[#allocation6 + $0x10]] }
 0x152   :  { %457 = vperm.xlu1 %1360, %v1650_v27   ;;  %756 = vperm.xlu0 %1383, %v1650_v27  }
 0x156   :  { %1361 = vset.pattern.permute.xlu1 %v1494_v57  ;;  %1386 = vset.pattern.permute.xlu0 %v1495_v58 }
 0x157   :  { %470 = vperm.xlu1 %1361, %v1650_v27   ;;  %795 = vperm.xlu0 %1386, %v1650_v27  }
 0x15b   :  { %1363 = vset.pattern.permute.xlu1 %v1496_v59  ;;  %1389 = vset.pattern.permute.xlu0 %v1497_v60 }
 0x15c   :  { %496 = vperm.xlu1 %1363, %v1650_v27   ;;  %834 = vperm.xlu0 %1389, %v1650_v27  }
 0x160   :  { %1364 = vset.pattern.permute.xlu1 %v1498_v61  ;;  %1392 = vset.pattern.permute.xlu0 %v1499_v62  ;;  %v242_v61 = vstv %s1738_s4  ;;  %v1514_v62 = vmov 43   ;;  %s1833_s4 = sld [smem:[#allocation3 + $0x14]] }
 0x161   :  { %509 = vperm.xlu1 %1364, %v1650_v27   ;;  %873 = vperm.xlu0 %1392, %v1650_v27  }
 0x165   :  { %1366 = vset.pattern.permute.xlu1 %v1500_v63  ;;  %1395 = vset.pattern.permute.xlu0 %v1501_v0  ;;  %v260_v63 = vmul.f32 %v259_v55, %v1708_v16 }
 0x166   :  { %535 = vperm.xlu1 %1366, %v1650_v27   ;;  %912 = vperm.xlu0 %1395, %v1650_v27  }
 0x16a   :  { %1367 = vset.pattern.permute.xlu1 %v1502_v1  ;;  %1398 = vset.pattern.permute.xlu0 %v1503_v2  ;;  %v285_v1 = vstv %s1741_s30  ;;  %v272_v2 = vstv %s1743_s13  ;;  %s1835_s30 = sld [smem:[#allocation3 + $0x13]]  ;;  %s1839_s13 = sld [smem:[#allocation6 + $0x11]] }
 0x16b   :  { %548 = vperm.xlu1 %1367, %v1650_v27   ;;  %951 = vperm.xlu0 %1398, %v1650_v27   ;;  %v286_v10 = vmul.f32 %v285_v1, %v1708_v16  ;;  %v273_v14 = vmul.f32 %v272_v2, %v1708_v16 }
 0x16f   :  { %1369 = vset.pattern.permute.xlu1 %v1504_v3  ;;  %1401 = vset.pattern.permute.xlu0 %v1505_v4 }
 0x170   :  { %574 = vperm.xlu1 %1369, %v1650_v27   ;;  %990 = vperm.xlu0 %1401, %v1650_v27  }
 0x174   :  { %1370 = vset.pattern.permute.xlu1 %v1506_v5  ;;  %1404 = vset.pattern.permute.xlu0 %v1464_v7 }
 0x175   :  { %587 = vperm.xlu1 %1370, %v1650_v27  }
 0x179   :  { %1372 = vset.pattern.permute.xlu1 %v1507_v8  ;;  %v255_v8 = vstv %s1747_s14  ;;  %s1844_s14 = sld [smem:[#allocation6 + $0x12]] }
 0x17a   :  { %613 = vperm.xlu1 %1372, %v1650_v27  }
 0x17e   :  { %1373 = vset.pattern.permute.xlu1 %v1508_v9 }
 0x17f   :  { %626 = vperm.xlu1 %1373, %v1650_v27  }
 0x183   :  { %1375 = vset.pattern.permute.xlu1 %v1509_v15 }
 0x184   :  { %652 = vperm.xlu1 %1375, %v1650_v27  }
 0x188   :  { %1376 = vset.pattern.permute.xlu1 %v1510_v18 }
 0x189   :  { %665 = vperm.xlu1 %1376, %v1650_v27  }
 0x18b   :  { %v185_v22 = vpop.permute.xlu1 %184  ;;  %v211_v28 = vpop.permute.xlu0 %210 }
 0x18c   :  { %v187_v23 = vadd.f32 %v185_v22, %v181_v19  ;;  %v213_v32 = vadd.f32 %v211_v28, %v208_v24  ;;  %v1516_v28 = vmov 46  }
 0x18d   :  { %1378 = vset.pattern.permute.xlu1 %v1511_v25 }
 0x18e   :  { %691 = vperm.xlu1 %1378, %v1650_v27   ;;  %v188_v31 = vmax.f32 %v187_v23, 0.0  ;;  %v214_v42 = vmax.f32 %v213_v32, 0.0  ;;  %v311_v32 = vstv %s1766_s19  ;;  %s1862_s19 = sld [smem:[#allocation6 + $0x14]] }
 0x190   :  { %v198_v30 = vpop.permute.xlu1 %197  ;;  %v191_v41 = vmul.f32 %v190_v34, %v188_v31  ;;  %v250_v51 = vpop.permute.xlu0 %249  ;;  %v217_v54 = vmul.f32 %v216_v45, %v214_v42  ;;  %v324_v31 = vstv %s1764_s18  ;;  %v312_v42 = vmul.f32 %v311_v32, %v1708_v16  ;;  %s1858_s18 = sld [smem:[#allocation3 + $0x16]] }
 0x191   :  { %v200_v33 = vadd.f32 %v198_v30, %v195_v26  ;;  %v252_v58 = vadd.f32 %v250_v51, %v247_v48  ;;  %v281_v26 = vstv %s1761_s17  ;;  %v325_v39 = vmul.f32 %v324_v31, %v1708_v16  ;;  %s1856_s17 = sld [smem:[#allocation3 + $0x17]] }
 0x192   :  { %1379 = vset.pattern.permute.xlu1 %v1512_v36 }
 0x193   :  { %v201_v38 = vmax.f32 %v200_v33, 0.0  ;;  %704 = vperm.xlu1 %1379, %v1650_v27   ;;  %v253_v3 = vmax.f32 %v252_v58, 0.0  ;;  %v350_v58 = vstv %s1789_s22  ;;  %s1887_s22 = sld [smem:[#allocation3 + $0x19]] }
 0x195   :  { %v204_v43 = vmul.f32 %v203_v35, %v201_v38  ;;  %v224_v44 = vpop.permute.xlu1 %223  ;;  %v289_v15 = vpop.permute.xlu0 %288  ;;  %v256_v19 = vmul.f32 %v255_v8, %v253_v3  ;;  %v1519_v3 = vmov 51  }
 0x196   :  { %v226_v46 = vadd.f32 %v224_v44, %v221_v37  ;;  %v291_v22 = vadd.f32 %v289_v15, %v286_v10  ;;  %v294_v37 = vstv %s1770_s20  ;;  %v307_v44 = vstv %s1775_s2  ;;  %s1867_s20 = sld [smem:[#allocation6 + $0x15]]  ;;  %s1869_s2 = sld [smem:[#allocation3 + $0x18]] }
 0x197   :  { %v205_v47 = vadd.f32 %v204_v43, %v191_v41  ;;  %1381 = vset.pattern.permute.xlu1 %v1513_v49  ;;  %v1517_v41 = vmov 48   ;;  %v376_v10 = vstv %s1800_s25  ;;  %s1898_s25 = sld [smem:[#allocation6 + $0x19]] }
 0x198   :  { %v227_v53 = vmax.f32 %v226_v46, 0.0  ;;  %730 = vperm.xlu1 %1381, %v1650_v27   ;;  %v292_v33 = vmax.f32 %v291_v22, 0.0  ;;  %v377_v20 = vmul.f32 %v376_v10, %v1708_v16  ;;  %v402_v22 = vstv %s1810_s27  ;;  %s1905_s27 = sld [smem:[#allocation6 + $0x1a]] }
 0x199   :  { %v218_v57 = vadd.f32 %v217_v54, %v205_v47  ;;  %v337_v47 = vstv %s1777_s7  ;;  %v1518_v54 = vmov 49   ;;  %v403_v31 = vmul.f32 %v402_v22, %v1708_v16  ;;  %s1876_s7 = sld [smem:[#allocation6 + $0x16]] }
 0x19a   :  { %v237_v56 = vpop.permute.xlu1 %236  ;;  %v230_v59 = vmul.f32 %v229_v52, %v227_v53  ;;  %v328_v43 = vpop.permute.xlu0 %327  ;;  %v295_v46 = vmul.f32 %v294_v37, %v292_v33  ;;  %v320_v53 = vstv %s1784_s8  ;;  %v338_v55 = vmul.f32 %v337_v47, %v1708_v16  ;;  %s1879_s8 = sld [smem:[#allocation3 + $0x1a]] }
 0x19b   :  { %v239_v60 = vadd.f32 %v237_v56, %v234_v50  ;;  %v330_v49 = vadd.f32 %v328_v43, %v325_v39  ;;  %v1521_v33 = vmov 54   ;;  %v415_v39 = vstv %s1823_s3  ;;  %s2008_s3 = sld [smem:[#allocation6 + $0x28]] }
 0x19c   :  { %1382 = vset.pattern.permute.xlu1 %v1514_v62  ;;  %v231_v4 = vadd.f32 %v230_v59, %v218_v57  ;;  %v363_v57 = vstv %s1787_s21  ;;  %v416_v47 = vmul.f32 %v415_v39, %v1708_v16  ;;  %s1883_s21 = sld [smem:[#allocation6 + $0x17]] }
 0x19d   :  { %v240_v0 = vmax.f32 %v239_v60, 0.0  ;;  %743 = vperm.xlu1 %1382, %v1650_v27   ;;  %v331_v59 = vmax.f32 %v330_v49, 0.0  ;;  %v364_v1 = vmul.f32 %v363_v57, %v1708_v16  ;;  %v441_v49 = vstv %s1833_s4  ;;  %s1924_s4 = sld [smem:[#allocation6 + $0x1c]] }
 0x19e   :  { %v442_v57 = vmul.f32 %v441_v49, %v1708_v16 }
 0x19f   :  { %v243_v5 = vmul.f32 %v242_v61, %v240_v0  ;;  %v263_v6 = vpop.permute.xlu1 %262 }
 0x1a0   :  { %v265_v9 = vadd.f32 %v263_v6, %v260_v63  ;;  %v333_v63 = vstv %s1793_s23  ;;  %v346_v6 = vstv %s1798_s24  ;;  %s1890_s23 = sld [smem:[#allocation6 + $0x18]]  ;;  %s1894_s24 = sld [smem:[#allocation3 + $0x1b]] }
 0x1a1   :  { %v244_v12 = vadd.f32 %v243_v5, %v231_v4  ;;  %1384 = vset.pattern.permute.xlu1 %v1515_v13  ;;  %v351_v4 = vmul.f32 %v350_v58, %v1708_v16  ;;  %v367_v5 = vpop.permute.xlu0 %366 }
 0x1a2   :  { %v266_v18 = vmax.f32 %v265_v9, 0.0  ;;  %769 = vperm.xlu1 %1384, %v1650_v27   ;;  %v334_v9 = vmul.f32 %v333_v63, %v331_v59  ;;  %v369_v13 = vadd.f32 %v367_v5, %v364_v1  ;;  %v1523_v59 = vmov 57  }
 0x1a3   :  { %v257_v23 = vadd.f32 %v256_v19, %v244_v12  ;;  %v1520_v19 = vmov 52   ;;  %v454_v1 = vstv %s1846_s15  ;;  %s1941_s15 = sld [smem:[#allocation3 + $0x21]] }
 0x1a4   :  { %v276_v21 = vpop.permute.xlu1 %275  ;;  %v269_v24 = vmul.f32 %v268_v17, %v266_v18  ;;  %v359_v18 = vstv %s1807_s26  ;;  %v455_v10 = vmul.f32 %v454_v1, %v1708_v16  ;;  %s1901_s26 = sld [smem:[#allocation3 + $0x1d]] }
 0x1a5   :  { %v278_v25 = vadd.f32 %v276_v21, %v273_v14 }
 0x1a6   :  { %1385 = vset.pattern.permute.xlu1 %v1516_v28  ;;  %v270_v34 = vadd.f32 %v269_v24, %v257_v23  ;;  %v389_v23 = vstv %s1812_s28  ;;  %v370_v24 = vmax.f32 %v369_v13, 0.0  ;;  %v480_v13 = vstv %s1856_s17  ;;  %s1909_s28 = sld [smem:[#allocation3 + $0x1c]]  ;;  %s1948_s17 = sld [smem:[#allocation3 + $0x23]] }
 0x1a7   :  { %v279_v30 = vmax.f32 %v278_v25, 0.0  ;;  %782 = vperm.xlu1 %1385, %v1650_v27   ;;  %v481_v22 = vmul.f32 %v480_v13, %v1708_v16 }
 0x1a9   :  { %v282_v35 = vmul.f32 %v281_v26, %v279_v30  ;;  %v302_v36 = vpop.permute.xlu1 %301 }
 0x1aa   :  { %v304_v38 = vadd.f32 %v302_v36, %v299_v29  ;;  %v372_v29 = vstv %s1816_s29  ;;  %v385_v36 = vstv %s1821_s9  ;;  %s1913_s29 = sld [smem:[#allocation6 + $0x1b]]  ;;  %v558_v1 = vstv %s1901_s26  ;;  %s1990_s26 = sld [smem:[#allocation3 + $0x29]] }
 0x1ab   :  { %v283_v40 = vadd.f32 %v282_v35, %v270_v34  ;;  %1387 = vset.pattern.permute.xlu1 %v1517_v41  ;;  %v390_v34 = vmul.f32 %v389_v23, %v1708_v16  ;;  %v406_v35 = vpop.permute.xlu0 %405  ;;  %s2004_s9 = sld [smem:[#allocation3 + $0x2a]] }
 0x1ac   :  { %v305_v45 = vmax.f32 %v304_v38, 0.0  ;;  %808 = vperm.xlu1 %1387, %v1650_v27   ;;  %v373_v38 = vmul.f32 %v372_v29, %v370_v24  ;;  %v408_v41 = vadd.f32 %v406_v35, %v403_v31  ;;  %v1525_v24 = vmov 60  }
 0x1ad   :  { %v296_v50 = vadd.f32 %v295_v46, %v283_v40  ;;  %v1522_v46 = vmov 55   ;;  %v493_v31 = vstv %s1869_s2  ;;  %s1962_s2 = sld [smem:[#allocation3 + $0x24]] }
 0x1ae   :  { %v315_v48 = vpop.permute.xlu1 %314  ;;  %v308_v51 = vmul.f32 %v307_v44, %v305_v45  ;;  %v398_v45 = vstv %s1830_s10  ;;  %v494_v39 = vmul.f32 %v493_v31, %v1708_v16  ;;  %s1920_s10 = sld [smem:[#allocation3 + $0x1e]] }
 0x1af   :  { %v317_v52 = vadd.f32 %v315_v48, %v312_v42 }
 0x1b0   :  { %1388 = vset.pattern.permute.xlu1 %v1518_v54  ;;  %v309_v60 = vadd.f32 %v308_v51, %v296_v50  ;;  %v428_v50 = vstv %s1835_s30  ;;  %v409_v51 = vmax.f32 %v408_v41, 0.0  ;;  %v519_v41 = vstv %s1879_s8  ;;  %s1931_s30 = sld [smem:[#allocation6 + $0x1d]]  ;;  %s1969_s8 = sld [smem:[#allocation3 + $0x26]] }
 0x1b1   :  { %v318_v56 = vmax.f32 %v317_v52, 0.0  ;;  %821 = vperm.xlu1 %1388, %v1650_v27   ;;  %v520_v49 = vmul.f32 %v519_v41, %v1708_v16 }
 0x1b3   :  { %v321_v61 = vmul.f32 %v320_v53, %v318_v56  ;;  %v341_v62 = vpop.permute.xlu1 %340 }
 0x1b4   :  { %v343_v0 = vadd.f32 %v341_v62, %v338_v55  ;;  %v411_v55 = vstv %s1839_s13  ;;  %v424_v62 = vstv %s1844_s14  ;;  %s1934_s13 = sld [smem:[#allocation3 + $0x1f]]  ;;  %s1938_s14 = sld [smem:[#allocation6 + $0x1e]] }
 0x1b5   :  { %v322_v2 = vadd.f32 %v321_v61, %v309_v60  ;;  %1390 = vset.pattern.permute.xlu1 %v1519_v3  ;;  %v429_v60 = vmul.f32 %v428_v50, %v1708_v16  ;;  %v445_v61 = vpop.permute.xlu0 %444 }
 0x1b6   :  { %v344_v8 = vmax.f32 %v343_v0, 0.0  ;;  %847 = vperm.xlu1 %1390, %v1650_v27   ;;  %v412_v0 = vmul.f32 %v411_v55, %v409_v51  ;;  %v447_v3 = vadd.f32 %v445_v61, %v442_v57  ;;  %v1527_v51 = vmov 63  }
 0x1b7   :  { %v335_v14 = vadd.f32 %v334_v9, %v322_v2  ;;  %v1524_v9 = vmov 58  }
 0x1b8   :  { %v354_v12 = vpop.permute.xlu1 %353  ;;  %v347_v15 = vmul.f32 %v346_v6, %v344_v8  ;;  %v437_v8 = vstv %s1853_s16  ;;  %s1945_s16 = sld [smem:[#allocation6 + $0x1f]] }
 0x1b9   :  { %v356_v17 = vadd.f32 %v354_v12, %v351_v4 }
 0x1ba   :  { %1391 = vset.pattern.permute.xlu1 %v1520_v19  ;;  %v348_v25 = vadd.f32 %v347_v15, %v335_v14  ;;  %v467_v14 = vstv %s1858_s18  ;;  %v448_v15 = vmax.f32 %v447_v3, 0.0  ;;  %s1952_s18 = sld [smem:[#allocation6 + $0x20]] }
 0x1bb   :  { %v357_v21 = vmax.f32 %v356_v17, 0.0  ;;  %860 = vperm.xlu1 %1391, %v1650_v27  }
 0x1bd   :  { %v360_v26 = vmul.f32 %v359_v18, %v357_v21  ;;  %v380_v28 = vpop.permute.xlu1 %379 }
 0x1be   :  { %v382_v30 = vadd.f32 %v380_v28, %v377_v20  ;;  %v450_v20 = vstv %s1862_s19  ;;  %v463_v28 = vstv %s1867_s20  ;;  %s1955_s19 = sld [smem:[#allocation3 + $0x22]]  ;;  %s1959_s20 = sld [smem:[#allocation6 + $0x21]] }
 0x1bf   :  { %v361_v32 = vadd.f32 %v360_v26, %v348_v25  ;;  %1393 = vset.pattern.permute.xlu1 %v1521_v33  ;;  %v468_v25 = vmul.f32 %v467_v14, %v1708_v16  ;;  %v484_v26 = vpop.permute.xlu0 %483  ;;  %v541_v14 = vstv %s1913_s29  ;;  %s2001_s29 = sld [smem:[#allocation6 + $0x27]] }
 0x1c0   :  { %v383_v37 = vmax.f32 %v382_v30, 0.0  ;;  %886 = vperm.xlu1 %1393, %v1650_v27   ;;  %v451_v30 = vmul.f32 %v450_v20, %v448_v15  ;;  %v486_v33 = vadd.f32 %v484_v26, %v481_v22  ;;  %v571_v20 = vstv %s1920_s10  ;;  %s2011_s10 = sld [smem:[#allocation3 + $0x2c]] }
 0x1c1   :  { %v374_v42 = vadd.f32 %v373_v38, %v361_v32  ;;  %v1526_v38 = vmov 61  }
 0x1c2   :  { %v393_v40 = vpop.permute.xlu1 %392  ;;  %v386_v43 = vmul.f32 %v385_v36, %v383_v37  ;;  %v476_v37 = vstv %s1876_s7  ;;  %s1966_s7 = sld [smem:[#allocation6 + $0x22]] }
 0x1c3   :  { %v395_v44 = vadd.f32 %v393_v40, %v390_v34 }
 0x1c4   :  { %1394 = vset.pattern.permute.xlu1 %v1522_v46  ;;  %v387_v52 = vadd.f32 %v386_v43, %v374_v42  ;;  %v487_v42 = vmax.f32 %v486_v33, 0.0  ;;  %v489_v46 = vstv %s1883_s21  ;;  %s1973_s21 = sld [smem:[#allocation6 + $0x23]] }
 0x1c5   :  { %v396_v48 = vmax.f32 %v395_v44, 0.0  ;;  %899 = vperm.xlu1 %1394, %v1650_v27  }
 0x1c6   :  { %v490_v55 = vmul.f32 %v489_v46, %v487_v42 }
 0x1c7   :  { %v399_v53 = vmul.f32 %v398_v45, %v396_v48  ;;  %v419_v54 = vpop.permute.xlu1 %418  ;;  %v506_v48 = vstv %s1887_s22  ;;  %s1976_s22 = sld [smem:[#allocation3 + $0x25]] }
 0x1c8   :  { %v421_v56 = vadd.f32 %v419_v54, %v416_v47 }
 0x1c9   :  { %v400_v58 = vadd.f32 %v399_v53, %v387_v52  ;;  %1396 = vset.pattern.permute.xlu1 %v1523_v59  ;;  %v523_v52 = vpop.permute.xlu0 %522  ;;  %v502_v53 = vstv %s1890_s23  ;;  %v1031_v59 = vld [vmem:[%s2190_s5] sm:$0x3]  ;;  %s1927_s5 = sld [smem:[#allocation3 + $0x20]]  ;;  %s1980_s23 = sld [smem:[#allocation6 + $0x24]] }
 0x1ca   :  { %v422_v63 = vmax.f32 %v421_v56, 0.0  ;;  %925 = vperm.xlu1 %1396, %v1650_v27   ;;  %v507_v56 = vmul.f32 %v506_v48, %v1708_v16 }
 0x1cb   :  { %v413_v4 = vadd.f32 %v412_v0, %v400_v58  ;;  %v532_v58 = vstv %s1894_s24  ;;  %s1983_s24 = sld [smem:[#allocation3 + $0x27]] }
 0x1cc   :  { %v432_v2 = vpop.permute.xlu1 %431  ;;  %v425_v5 = vmul.f32 %v424_v62, %v422_v63 }
 0x1cd   :  { %v434_v6 = vadd.f32 %v432_v2, %v429_v60  ;;  %v525_v60 = vadd.f32 %v523_v52, %v520_v49  ;;  %v533_v2 = vmul.f32 %v532_v58, %v1708_v16  ;;  %v562_v13 = vpop.permute.xlu0 %561  ;;  %v636_v52 = vstv %s1948_s17  ;;  %s2039_s17 = sld [smem:[#allocation3 + $0x2e]] }
 0x1ce   :  { %1397 = vset.pattern.permute.xlu1 %v1524_v9  ;;  %v426_v17 = vadd.f32 %v425_v5, %v413_v4  ;;  %v606_v58 = vstv %s1952_s18  ;;  %s2043_s18 = sld [smem:[#allocation6 + $0x2d]] }
 0x1cf   :  { %v435_v12 = vmax.f32 %v434_v6, 0.0  ;;  %938 = vperm.xlu1 %1397, %v1650_v27   ;;  %v526_v3 = vmax.f32 %v525_v60, 0.0  ;;  %v623_v60 = vstv %s1955_s19  ;;  %s2046_s19 = sld [smem:[#allocation3 + $0x30]] }
 0x1d1   :  { %v438_v18 = vmul.f32 %v437_v8, %v435_v12  ;;  %v458_v19 = vpop.permute.xlu1 %457  ;;  %v528_v8 = vstv %s1905_s27  ;;  %s1994_s27 = sld [smem:[#allocation6 + $0x26]] }
 0x1d2   :  { %v460_v21 = vadd.f32 %v458_v19, %v455_v10  ;;  %v559_v10 = vmul.f32 %v558_v1, %v1708_v16 }
 0x1d3   :  { %v439_v23 = vadd.f32 %v438_v18, %v426_v17  ;;  %1399 = vset.pattern.permute.xlu1 %v1525_v24  ;;  %v529_v17 = vmul.f32 %v528_v8, %v526_v3 }
 0x1d4   :  { %v461_v29 = vmax.f32 %v460_v21, 0.0  ;;  %964 = vperm.xlu1 %1399, %v1650_v27   ;;  %v564_v21 = vadd.f32 %v562_v13, %v559_v10 }
 0x1d5   :  { %v452_v34 = vadd.f32 %v451_v30, %v439_v23 }
 0x1d6   :  { %v471_v32 = vpop.permute.xlu1 %470  ;;  %v464_v35 = vmul.f32 %v463_v28, %v461_v29  ;;  %v597_v28 = vstv %s1927_s5  ;;  %v572_v29 = vmul.f32 %v571_v20, %v1708_v16  ;;  %v565_v30 = vmax.f32 %v564_v21, 0.0  ;;  %s2018_s5 = sld [smem:[#allocation3 + $0x2b]] }
 0x1d7   :  { %v473_v36 = vadd.f32 %v471_v32, %v468_v25  ;;  %v554_v25 = vstv %s1924_s4  ;;  %v662_v21 = vstv %s1976_s22  ;;  %s2015_s4 = sld [smem:[#allocation6 + $0x29]]  ;;  %s2067_s22 = sld [smem:[#allocation3 + $0x33]] }
 0x1d8   :  { %1400 = vset.pattern.permute.xlu1 %v1526_v38  ;;  %v465_v43 = vadd.f32 %v464_v35, %v452_v34  ;;  %v567_v34 = vstv %s1931_s30  ;;  %s2022_s30 = sld [smem:[#allocation6 + $0x2a]] }
 0x1d9   :  { %v474_v40 = vmax.f32 %v473_v36, 0.0  ;;  %977 = vperm.xlu1 %1400, %v1650_v27   ;;  %v584_v36 = vstv %s1934_s13  ;;  %v568_v42 = vmul.f32 %v567_v34, %v565_v30  ;;  %s2025_s13 = sld [smem:[#allocation3 + $0x2d]] }
 0x1db   :  { %v477_v44 = vmul.f32 %v476_v37, %v474_v40  ;;  %v497_v45 = vpop.permute.xlu1 %496  ;;  %v598_v37 = vmul.f32 %v597_v28, %v1708_v16  ;;  %v580_v40 = vstv %s1938_s14  ;;  %s2029_s14 = sld [smem:[#allocation6 + $0x2b]] }
 0x1dc   :  { %v499_v47 = vadd.f32 %v497_v45, %v494_v39  ;;  %v601_v39 = vpop.permute.xlu0 %600  ;;  %v610_v45 = vstv %s1941_s15  ;;  %s2032_s15 = sld [smem:[#allocation3 + $0x2f]] }
 0x1dd   :  { %v478_v50 = vadd.f32 %v477_v44, %v465_v43  ;;  %1402 = vset.pattern.permute.xlu1 %v1527_v51  ;;  %v585_v43 = vmul.f32 %v584_v36, %v1708_v16  ;;  %v603_v46 = vadd.f32 %v601_v39, %v598_v37 }
 0x1de   :  { %v500_v54 = vmax.f32 %v499_v47, 0.0  ;;  %1003 = vperm.xlu1 %1402, %v1650_v27   ;;  %v515_v27 = vstv %s1898_s25  ;;  %s1987_s25 = sld [smem:[#allocation6 + $0x25]] }
 0x1df   :  { %v491_v61 = vadd.f32 %v490_v55, %v478_v50  ;;  %v593_v50 = vstv %s1945_s16  ;;  %s2036_s16 = sld [smem:[#allocation6 + $0x2c]] }
 0x1e0   :  { %v510_v57 = vpop.permute.xlu1 %509  ;;  %v503_v62 = vmul.f32 %v502_v53, %v500_v54  ;;  %v611_v53 = vmul.f32 %v610_v45, %v1708_v16  ;;  %v604_v54 = vmax.f32 %v603_v46, 0.0 }
 0x1e1   :  { %v512_v63 = vadd.f32 %v510_v57, %v507_v56 }
 0x1e2   :  { %1403 = vset.pattern.permute.xlu1 %v1464_v7  ;;  %v504_v4 = vadd.f32 %v503_v62, %v491_v61  ;;  %v545_v7 = vstv %s1909_s28  ;;  %v637_v61 = vmul.f32 %v636_v52, %v1708_v16  ;;  %v607_v1 = vmul.f32 %v606_v58, %v604_v54  ;;  %s1997_s28 = sld [smem:[#allocation3 + $0x28]] }
 0x1e3   :  { %v513_v0 = vmax.f32 %v512_v63, 0.0  ;;  %1034 = vperm.xlu1 %1403, %v1031_v59   ;;  %v546_v18 = vmul.f32 %v545_v7, %v1708_v16  ;;  %v640_v63 = vpop.permute.xlu0 %639  ;;  %v632_v7 = vstv %s1966_s7  ;;  %s2057_s7 = sld [smem:[#allocation6 + $0x2f]] }
 0x1e4   :  { %v671_v36 = vstv %s1987_s25  ;;  %s2078_s25 = sld [smem:[#allocation6 + $0x32]] }
 0x1e5   :  { %v516_v5 = vmul.f32 %v515_v27, %v513_v0  ;;  %v536_v6 = vpop.permute.xlu1 %535  ;;  %v619_v27 = vstv %s1959_s20  ;;  %s2050_s20 = sld [smem:[#allocation6 + $0x2e]] }
 0x1e6   :  { %v538_v9 = vadd.f32 %v536_v6, %v533_v2  ;;  %v624_v2 = vmul.f32 %v623_v60, %v1708_v16  ;;  %v710_v60 = vstv %s2008_s3  ;;  %s2098_s3 = sld [smem:[#allocation6 + $0x35]] }
 0x1e7   :  { %v517_v12 = vadd.f32 %v516_v5, %v504_v4  ;;  %v649_v4 = vstv %s1962_s2  ;;  %v642_v5 = vadd.f32 %v640_v63, %v637_v61  ;;  %s2053_s2 = sld [smem:[#allocation3 + $0x32]] }
 0x1e8   :  { %v539_v15 = vmax.f32 %v538_v9, 0.0  ;;  %v650_v13 = vmul.f32 %v649_v4, %v1708_v16  ;;  %v701_v46 = vstv %s1997_s28  ;;  %s2088_s28 = sld [smem:[#allocation3 + $0x36]] }
 0x1e9   :  { %v530_v22 = vadd.f32 %v529_v17, %v517_v12  ;;  %v675_v12 = vstv %s1969_s8  ;;  %s2060_s8 = sld [smem:[#allocation3 + $0x31]] }
 0x1ea   :  { %v549_v19 = vpop.permute.xlu1 %548  ;;  %v542_v23 = vmul.f32 %v541_v14, %v539_v15  ;;  %v643_v14 = vmax.f32 %v642_v5, 0.0  ;;  %v740_v5 = vstv %s2018_s5  ;;  %s2109_s5 = sld [smem:[#allocation3 + $0x39]] }
 0x1eb   :  { %v551_v24 = vadd.f32 %v549_v19, %v546_v18  ;;  %v645_v19 = vstv %s1973_s21  ;;  %s2064_s21 = sld [smem:[#allocation6 + $0x30]] }
 0x1ec   :  { %v543_v31 = vadd.f32 %v542_v23, %v530_v22  ;;  %v676_v22 = vmul.f32 %v675_v12, %v1708_v16  ;;  %v646_v28 = vmul.f32 %v645_v19, %v643_v14 }
 0x1ed   :  { %v552_v26 = vmax.f32 %v551_v24, 0.0  ;;  %v679_v24 = vpop.permute.xlu0 %678 }
 0x1ef   :  { %v555_v32 = vmul.f32 %v554_v25, %v552_v26  ;;  %v575_v33 = vpop.permute.xlu1 %574  ;;  %v658_v25 = vstv %s1980_s23  ;;  %s2071_s23 = sld [smem:[#allocation6 + $0x31]] }
 0x1f0   :  { %v577_v35 = vadd.f32 %v575_v33, %v572_v29  ;;  %v663_v29 = vmul.f32 %v662_v21, %v1708_v16  ;;  %v749_v21 = vstv %s2029_s14  ;;  %s2119_s14 = sld [smem:[#allocation6 + $0x38]] }
 0x1f1   :  { %v556_v38 = vadd.f32 %v555_v32, %v543_v31  ;;  %v688_v31 = vstv %s1983_s24  ;;  %v681_v32 = vadd.f32 %v679_v24, %v676_v22  ;;  %s2076_s24 = sld [smem:[#allocation3 + $0x35]] }
 0x1f2   :  { %v578_v41 = vmax.f32 %v577_v35, 0.0  ;;  %v689_v39 = vmul.f32 %v688_v31, %v1708_v16 }
 0x1f3   :  { %v569_v47 = vadd.f32 %v568_v42, %v556_v38  ;;  %v714_v38 = vstv %s1990_s26  ;;  %s2081_s26 = sld [smem:[#allocation3 + $0x34]] }
 0x1f4   :  { %v588_v44 = vpop.permute.xlu1 %587  ;;  %v581_v48 = vmul.f32 %v580_v40, %v578_v41  ;;  %v682_v40 = vmax.f32 %v681_v32, 0.0  ;;  %v779_v32 = vstv %s2039_s17  ;;  %s2130_s17 = sld [smem:[#allocation3 + $0x3c]] }
 0x1f5   :  { %v590_v49 = vadd.f32 %v588_v44, %v585_v43  ;;  %v684_v44 = vstv %s1994_s27  ;;  %s2085_s27 = sld [smem:[#allocation6 + $0x33]] }
 0x1f6   :  { %v582_v55 = vadd.f32 %v581_v48, %v569_v47  ;;  %v715_v47 = vmul.f32 %v714_v38, %v1708_v16  ;;  %v685_v52 = vmul.f32 %v684_v44, %v682_v40 }
 0x1f7   :  { %v591_v51 = vmax.f32 %v590_v49, 0.0  ;;  %v718_v49 = vpop.permute.xlu0 %717 }
 0x1f9   :  { %v594_v56 = vmul.f32 %v593_v50, %v591_v51  ;;  %v614_v57 = vpop.permute.xlu1 %613  ;;  %v697_v50 = vstv %s2001_s29  ;;  %s2091_s29 = sld [smem:[#allocation6 + $0x34]] }
 0x1fa   :  { %v616_v59 = vadd.f32 %v614_v57, %v611_v53  ;;  %v702_v53 = vmul.f32 %v701_v46, %v1708_v16  ;;  %v788_v46 = vstv %s2050_s20  ;;  %s2140_s20 = sld [smem:[#allocation6 + $0x3b]] }
 0x1fb   :  { %v595_v62 = vadd.f32 %v594_v56, %v582_v55  ;;  %v727_v55 = vstv %s2004_s9  ;;  %v720_v56 = vadd.f32 %v718_v49, %v715_v47  ;;  %s2096_s9 = sld [smem:[#allocation3 + $0x38]] }
 0x1fc   :  { %v617_v0 = vmax.f32 %v616_v59, 0.0  ;;  %v728_v63 = vmul.f32 %v727_v55, %v1708_v16 }
 0x1fd   :  { %v608_v6 = vadd.f32 %v607_v1, %v595_v62  ;;  %v753_v62 = vstv %s2011_s10  ;;  %s2101_s10 = sld [smem:[#allocation3 + $0x37]] }
 0x1fe   :  { %v627_v3 = vpop.permute.xlu1 %626  ;;  %v620_v8 = vmul.f32 %v619_v27, %v617_v0  ;;  %v721_v27 = vmax.f32 %v720_v56, 0.0  ;;  %v818_v56 = vstv %s2060_s8  ;;  %s2149_s8 = sld [smem:[#allocation3 + $0x3f]] }
 0x1ff   :  { %v629_v9 = vadd.f32 %v627_v3, %v624_v2  ;;  %v723_v3 = vstv %s2015_s4  ;;  %s2106_s4 = sld [smem:[#allocation6 + $0x36]] }
 0x200   :  { %v621_v15 = vadd.f32 %v620_v8, %v608_v6  ;;  %v754_v6 = vmul.f32 %v753_v62, %v1708_v16  ;;  %v724_v12 = vmul.f32 %v723_v3, %v721_v27 }
 0x201   :  { %v630_v10 = vmax.f32 %v629_v9, 0.0  ;;  %v757_v9 = vpop.permute.xlu0 %756 }
 0x203   :  { %v633_v17 = vmul.f32 %v632_v7, %v630_v10  ;;  %v653_v18 = vpop.permute.xlu1 %652  ;;  %v736_v7 = vstv %s2022_s30  ;;  %s2112_s30 = sld [smem:[#allocation6 + $0x37]] }
 0x204   :  { %v655_v20 = vadd.f32 %v653_v18, %v650_v13  ;;  %v741_v13 = vmul.f32 %v740_v5, %v1708_v16  ;;  %v827_v5 = vstv %s2071_s23  ;;  %s1205_s23 = sld [smem:[#allocation6 + $0x3f]] }
 0x205   :  { %v634_v23 = vadd.f32 %v633_v17, %v621_v15  ;;  %v766_v15 = vstv %s2025_s13  ;;  %v759_v17 = vadd.f32 %v757_v9, %v754_v6  ;;  %s2117_s13 = sld [smem:[#allocation3 + $0x3b]] }
 0x206   :  { %v656_v26 = vmax.f32 %v655_v20, 0.0  ;;  %v767_v24 = vmul.f32 %v766_v15, %v1708_v16 }
 0x207   :  { %v647_v33 = vadd.f32 %v646_v28, %v634_v23  ;;  %v792_v23 = vstv %s2032_s15  ;;  %s2122_s15 = sld [smem:[#allocation3 + $0x3a]] }
 0x208   :  { %v666_v30 = vpop.permute.xlu1 %665  ;;  %v659_v34 = vmul.f32 %v658_v25, %v656_v26  ;;  %v760_v25 = vmax.f32 %v759_v17, 0.0  ;;  %v857_v17 = vstv %s2081_s26 }
 0x209   :  { %v668_v35 = vadd.f32 %v666_v30, %v663_v29  ;;  %v762_v30 = vstv %s2036_s16  ;;  %s2127_s16 = sld [smem:[#allocation6 + $0x39]] }
 0x20a   :  { %v660_v41 = vadd.f32 %v659_v34, %v647_v33  ;;  %v793_v33 = vmul.f32 %v792_v23, %v1708_v16  ;;  %v763_v38 = vmul.f32 %v762_v30, %v760_v25 }
 0x20b   :  { %v669_v37 = vmax.f32 %v668_v35, 0.0  ;;  %v796_v35 = vpop.permute.xlu0 %795 }
 0x20d   :  { %v672_v42 = vmul.f32 %v671_v36, %v669_v37  ;;  %v692_v43 = vpop.permute.xlu1 %691  ;;  %v775_v36 = vstv %s2043_s18  ;;  %s2133_s18 = sld [smem:[#allocation6 + $0x3a]] }
 0x20e   :  { %v694_v45 = vadd.f32 %v692_v43, %v689_v39  ;;  %v780_v39 = vmul.f32 %v779_v32, %v1708_v16  ;;  %v866_v32 = vstv %s2091_s29 }
 0x20f   :  { %v673_v48 = vadd.f32 %v672_v42, %v660_v41  ;;  %v805_v41 = vstv %s2046_s19  ;;  %v798_v42 = vadd.f32 %v796_v35, %v793_v33  ;;  %s2137_s19 = sld [smem:[#allocation3 + $0x3e]] }
 0x210   :  { %v695_v51 = vmax.f32 %v694_v45, 0.0  ;;  %v806_v49 = vmul.f32 %v805_v41, %v1708_v16 }
 0x211   :  { %v686_v57 = vadd.f32 %v685_v52, %v673_v48  ;;  %v831_v48 = vstv %s2053_s2  ;;  %s2143_s2 = sld [smem:[#allocation3 + $0x3d]] }
 0x212   :  { %v705_v54 = vpop.permute.xlu1 %704  ;;  %v698_v58 = vmul.f32 %v697_v50, %v695_v51  ;;  %v799_v50 = vmax.f32 %v798_v42, 0.0  ;;  %v896_v42 = vstv %s2101_s10  ;;  %s1528_s10 = smov [#allocation8]  }
 0x213   :  { %v707_v59 = vadd.f32 %v705_v54, %v702_v53  ;;  %v801_v54 = vstv %s2057_s7  ;;  %s1199_s7 = sld [smem:[#allocation6 + $0x3c]] }
 0x214   :  { %v699_v0 = vadd.f32 %v698_v58, %v686_v57  ;;  %v832_v57 = vmul.f32 %v831_v48, %v1708_v16  ;;  %v802_v62 = vmul.f32 %v801_v54, %v799_v50 }
 0x215   :  { %v708_v61 = vmax.f32 %v707_v59, 0.0  ;;  %v835_v59 = vpop.permute.xlu0 %834 }
 0x217   :  { %v711_v1 = vmul.f32 %v710_v60, %v708_v61  ;;  %v731_v2 = vpop.permute.xlu1 %730  ;;  %v814_v60 = vstv %s2064_s21  ;;  %s1201_s21 = sld [smem:[#allocation6 + $0x3d]] }
 0x218   :  { %v733_v4 = vadd.f32 %v731_v2, %v728_v63  ;;  %v819_v63 = vmul.f32 %v818_v56, %v1708_v16  ;;  %v905_v56 = vstv %s2112_s30 }
 0x219   :  { %v712_v8 = vadd.f32 %v711_v1, %v699_v0  ;;  %v844_v0 = vstv %s2067_s22  ;;  %v837_v1 = vadd.f32 %v835_v59, %v832_v57  ;;  %s1203_s22 = sld [smem:[#allocation6 + $0x3e]] }
 0x21a   :  { %v734_v10 = vmax.f32 %v733_v4, 0.0 }
 0x21b   :  { %v725_v18 = vadd.f32 %v724_v12, %v712_v8  ;;  %v845_v8 = vmul.f32 %v844_v0, %v1708_v16  ;;  %v838_v9 = vmax.f32 %v837_v1, 0.0  ;;  %v935_v1 = vstv %s2122_s15 }
 0x21c   :  { %v744_v14 = vpop.permute.xlu1 %743  ;;  %v737_v19 = vmul.f32 %v736_v7, %v734_v10 }
 0x21d   :  { %v746_v20 = vadd.f32 %v744_v14, %v741_v13  ;;  %v840_v13 = vstv %s2078_s25  ;;  %v870_v14 = vstv %s2076_s24 }
 0x21e   :  { %v738_v26 = vadd.f32 %v737_v19, %v725_v18  ;;  %v874_v19 = vpop.permute.xlu0 %873  ;;  %v871_v23 = vmul.f32 %v870_v14, %v1708_v16 }
 0x21f   :  { %v747_v22 = vmax.f32 %v746_v20, 0.0  ;;  %v853_v20 = vstv %s2085_s27 }
 0x221   :  { %v750_v28 = vmul.f32 %v749_v21, %v747_v22  ;;  %v770_v29 = vpop.permute.xlu1 %769  ;;  %v841_v22 = vmul.f32 %v840_v13, %v838_v9  ;;  %v936_v9 = vmul.f32 %v935_v1, %v1708_v16 }
 0x222   :  { %v772_v31 = vadd.f32 %v770_v29, %v767_v24  ;;  %v858_v24 = vmul.f32 %v857_v17, %v1708_v16  ;;  %v944_v17 = vstv %s2133_s18 }
 0x223   :  { %v751_v34 = vadd.f32 %v750_v28, %v738_v26  ;;  %v883_v26 = vstv %s2088_s28  ;;  %v876_v28 = vadd.f32 %v874_v19, %v871_v23  ;;  %v987_v19 = vstv %s2137_s19 }
 0x224   :  { %v773_v37 = vmax.f32 %v772_v31, 0.0 }
 0x225   :  { %v764_v43 = vadd.f32 %v763_v38, %v751_v34  ;;  %v884_v34 = vmul.f32 %v883_v26, %v1708_v16  ;;  %v877_v35 = vmax.f32 %v876_v28, 0.0 }
 0x226   :  { %v783_v40 = vpop.permute.xlu1 %782  ;;  %v776_v44 = vmul.f32 %v775_v36, %v773_v37 }
 0x227   :  { %v785_v45 = vadd.f32 %v783_v40, %v780_v39  ;;  %v879_v39 = vstv %s2098_s3  ;;  %v909_v40 = vstv %s2096_s9 }
 0x228   :  { %v777_v51 = vadd.f32 %v776_v44, %v764_v43  ;;  %v913_v44 = vpop.permute.xlu0 %912  ;;  %v910_v48 = vmul.f32 %v909_v40, %v1708_v16 }
 0x229   :  { %v786_v47 = vmax.f32 %v785_v45, 0.0  ;;  %v892_v45 = vstv %s2106_s4  ;;  %s1068_s4 = sshll.u32 %s1528_s10, 4  ;;  %s1069_s4 = int_to_ptr.vmem [resolvable:$true] %s1068_s4 }
 0x22a   :  { %s1431_s30 = scalar_lea.vmem %s1069_s4, 16  ;;  %p1436_p11 = scmp.lt.s32.totalorder %s1069_s4, %s1069_s4 }
 0x22b   :  { %v789_v52 = vmul.f32 %v788_v46, %v786_v47  ;;  %v809_v53 = vpop.permute.xlu1 %808  ;;  %v880_v47 = vmul.f32 %v879_v39, %v877_v35  ;;  %p1432_p10 = scmp.ne.s32.totalorder %s1069_s4, %s1431_s30 }
 0x22c   :  { %v811_v55 = vadd.f32 %v809_v53, %v806_v49  ;;  %v897_v49 = vmul.f32 %v896_v42, %v1708_v16  ;;  %v983_v42 = vstv %s1201_s21 }
 0x22d   :  { %v790_v58 = vadd.f32 %v789_v52, %v777_v51  ;;  %v922_v51 = vstv %s2109_s5  ;;  %v915_v52 = vadd.f32 %v913_v44, %v910_v48 }
 0x22e   :  { %v812_v61 = vmax.f32 %v811_v55, 0.0 }
 0x22f   :  { %v803_v2 = vadd.f32 %v802_v62, %v790_v58  ;;  %v923_v58 = vmul.f32 %v922_v51, %v1708_v16  ;;  %v916_v59 = vmax.f32 %v915_v52, 0.0 }
 0x230   :  { %v822_v27 = vpop.permute.xlu1 %821  ;;  %v815_v3 = vmul.f32 %v814_v60, %v812_v61 }
 0x231   :  { %v824_v4 = vadd.f32 %v822_v27, %v819_v63  ;;  %v918_v63 = vstv %s2119_s14  ;;  %v948_v27 = vstv %s2117_s13  ;;  %s1435_s13 = scalar_lea.vmem %s1069_s4, 32 }
 0x232   :  { %v816_v7 = vadd.f32 %v815_v3, %v803_v2  ;;  %v952_v3 = vpop.permute.xlu0 %951  ;;  %p1437_p12 = scmp.lt.s32.totalorder %s1435_s13, %s1431_s30 }
 0x233   :  { %v825_v6 = vmax.f32 %v824_v4, 0.0  ;;  %v931_v4 = vstv %s2127_s16 }
 0x234   :  { %p1438_p13 = por %p1437_p12, %p1436_p11 }
 0x235   :  { %v828_v10 = vmul.f32 %v827_v5, %v825_v6  ;;  %v848_v12 = vpop.permute.xlu1 %847  ;;  %v919_v6 = vmul.f32 %v918_v63, %v916_v59 }
 0x236   :  { %v850_v15 = vadd.f32 %v848_v12, %v845_v8  ;;  %v949_v8 = vmul.f32 %v948_v27, %v1708_v16  ;;  %v991_v26 = vpop.permute.xlu0 %990  ;;  %p1439_p0 = pnand %p1438_p13, %p1432_p10 }
 0x237   :  { %v829_v18 = vadd.f32 %v828_v10, %v816_v7  ;;  %v961_v10 = vstv %s2130_s17 }
 0x238   :  { %v851_v21 = vmax.f32 %v850_v15, 0.0  ;;  %v954_v12 = vadd.f32 %v952_v3, %v949_v8  ;;  %v1406_v3 = vld [vmem:[%s2185_s0] sm:$0x3] }
 0x239   :  { %v842_v29 = vadd.f32 %v841_v22, %v829_v18 }
 0x23a   :  { %v861_v25 = vpop.permute.xlu1 %860  ;;  %v854_v30 = vmul.f32 %v853_v20, %v851_v21  ;;  %v962_v20 = vmul.f32 %v961_v10, %v1708_v16  ;;  %v955_v21 = vmax.f32 %v954_v12, 0.0 }
 0x23b   :  { %v863_v31 = vadd.f32 %v861_v25, %v858_v24  ;;  %v957_v25 = vstv %s2140_s20 }
 0x23c   :  { %v855_v36 = vadd.f32 %v854_v30, %v842_v29  ;;  %v974_v29 = vstv %s2143_s2  ;;  %v988_v30 = vmul.f32 %v987_v19, %v1708_v16 }
 0x23d   :  { %v864_v33 = vmax.f32 %v863_v31, 0.0 }
 0x23e   :  { %v993_v35 = vadd.f32 %v991_v26, %v988_v30 }
 0x23f   :  { %v867_v37 = vmul.f32 %v866_v32, %v864_v33  ;;  %v887_v38 = vpop.permute.xlu1 %886  ;;  %v970_v32 = vstv %s1199_s7 }
 0x240   :  { %v889_v41 = vadd.f32 %v887_v38, %v884_v34  ;;  %v958_v34 = vmul.f32 %v957_v25, %v955_v21 }
 0x241   :  { %v868_v43 = vadd.f32 %v867_v37, %v855_v36  ;;  %v975_v36 = vmul.f32 %v974_v29, %v1708_v16 }
 0x242   :  { %v890_v46 = vmax.f32 %v889_v41, 0.0  ;;  %v1000_v41 = vstv %s2149_s8 }
 0x243   :  { %v881_v53 = vadd.f32 %v880_v47, %v868_v43  ;;  %v994_v43 = vmax.f32 %v993_v35, 0.0 }
 0x244   :  { %v900_v50 = vpop.permute.xlu1 %899  ;;  %v893_v54 = vmul.f32 %v892_v45, %v890_v46  ;;  %v996_v45 = vstv %s1203_s22  ;;  %v1001_v46 = vmul.f32 %v1000_v41, %v1708_v16 }
 0x245   :  { %v902_v55 = vadd.f32 %v900_v50, %v897_v49  ;;  %v997_v51 = vmul.f32 %v996_v45, %v994_v43 }
 0x246   :  { %v894_v60 = vadd.f32 %v893_v54, %v881_v53  ;;  %v1009_v53 = vstv %s1205_s23 }
 0x247   :  { %v903_v57 = vmax.f32 %v902_v55, 0.0 }
 0x249   :  { %v906_v61 = vmul.f32 %v905_v56, %v903_v57  ;;  %v926_v62 = vpop.permute.xlu1 %925  ;;  %v1013_v57 = vstv %s2196_s11 }
 0x24a   :  { %v928_v0 = vadd.f32 %v926_v62, %v923_v58 }
 0x24b   :  { %v907_v2 = vadd.f32 %v906_v61, %v894_v60  ;;  %v1405_v61 = vld [vmem:[%s2186_s1] sm:$0x3] }
 0x24c   :  { %v929_v5 = vmax.f32 %v928_v0, 0.0 }
 0x24d   :  { %v920_v13 = vadd.f32 %v919_v6, %v907_v2 }
 0x24e   :  { %v939_v7 = vpop.permute.xlu1 %938  ;;  %v932_v14 = vmul.f32 %v931_v4, %v929_v5 }
 0x24f   :  { %v941_v15 = vadd.f32 %v939_v7, %v936_v9 }
 0x250   :  { %v933_v22 = vadd.f32 %v932_v14, %v920_v13 }
 0x251   :  { %v942_v18 = vmax.f32 %v941_v15, 0.0 }
 0x253   :  { %v945_v23 = vmul.f32 %v944_v17, %v942_v18  ;;  %v965_v24 = vpop.permute.xlu1 %964 }
 0x254   :  { %v967_v28 = vadd.f32 %v965_v24, %v962_v20 }
 0x255   :  { %v946_v31 = vadd.f32 %v945_v23, %v933_v22 }
 0x256   :  { %v968_v33 = vmax.f32 %v967_v28, 0.0 }
 0x257   :  { %v959_v38 = vadd.f32 %v958_v34, %v946_v31 }
 0x258   :  { %v978_v37 = vpop.permute.xlu1 %977  ;;  %v971_v39 = vmul.f32 %v970_v32, %v968_v33 }
 0x259   :  { %v980_v40 = vadd.f32 %v978_v37, %v975_v36 }
 0x25a   :  { %v972_v47 = vadd.f32 %v971_v39, %v959_v38 }
 0x25b   :  { %v981_v44 = vmax.f32 %v980_v40, 0.0 }
 0x25d   :  { %v984_v48 = vmul.f32 %v983_v42, %v981_v44  ;;  %v1004_v49 = vpop.permute.xlu1 %1003 }
 0x25e   :  { %v1006_v50 = vadd.f32 %v1004_v49, %v1001_v46 }
 0x25f   :  { %v985_v52 = vadd.f32 %v984_v48, %v972_v47 }
 0x260   :  { %v1007_v54 = vmax.f32 %v1006_v50, 0.0 }
 0x261   :  { %v998_v55 = vadd.f32 %v997_v51, %v985_v52 }
 0x262   :  { %v1010_v56 = vmul.f32 %v1009_v53, %v1007_v54  ;;  %v1035_v63 = vpop.permute.xlu1 %1034 }
 0x264   :  { %v1011_v58 = vadd.f32 %v1010_v56, %v998_v55 }
 0x266   :  { %v1014_v59 = vadd.f32 %v1013_v57, %v1011_v58 }
 0x268   :  { %v1029_v60 = vmul.f32 %v1014_v59, %v1700_v11  ;;  %v1015_v62 = vsub.f32 %v1405_v61, %v1014_v59 }
 0x26a   :  { %v1030_v27 = vsub.f32 %v1708_v16, %v1029_v60  ;;  %v1016_v0 = vmul.f32 %v1015_v62, %v1015_v62  ;;  %v1044_v16 = vld [vmem:[%s2191_s6] sm:$0x3] }
 0x26c   :  { %v1037_v1 = vmul.f32 %v1035_v63, %v1030_v27  ;;  %v1018_v2 = vsel %vm1017_vm2, %v1016_v0, 0.0 }
 0x26d   :  { %1019 = vadd.xlane.f32.xlu1 %v1018_v2 }
 0x26e   :  { %v1038_v4 = vsub.f32 %v1037_v1, %v1406_v3 }
 0x270   :  { %v1039_v5 = vmul.f32 %v1038_v4, %v1038_v4 }
 0x272   :  { %v1040_v11 = vsel %vm1017_vm2, %v1039_v5, 0.0 }
 0x273   :  { %1041 = vadd.xlane.f32.xlu0 %v1040_v11 }
 0x2fa   :  { %v1020_v6 = vpop.xlane.xlu1 %1019 }
 0x2fb   :  { %v1021_v8 = vrot.slane %v1020_v6, 4 }
 0x2fd   :  { %v1022_v9 = vadd.f32 %v1021_v8, %v1020_v6 }
 0x2ff   :  { %v1023_v7 = vrot.slane %v1022_v9, 2 }
 0x300   :  { %v1042_v10 = vpop.xlane.xlu0 %1041 }
 0x301   :  { %v1043_v12 = vmul.f32 0.0078125, %v1042_v10  ;;  %v1024_v13 = vadd.f32 %v1023_v7, %v1022_v9 }
 0x303   :  { %v1045_v14 = vmul.f32 %v1044_v16, %v1043_v12  ;;  %v1025_v15 = vrot.slane %v1024_v13, 1 }
 0x305   :  { %v1047_v17 = vsel %vm1046_vm3, %v1045_v14, 0.0  ;;  %v1026_v18 = vadd.f32 %v1025_v15, %v1024_v13 }
 0x306   :  { %1048 = vadd.xlane.f32.xlu0 %v1047_v17 }
 0x307   :  { %1264 = vpush %v1026_v18 }
 0x338   :  { %s1265_s0 = spop %1264 }
 0x339   :  { %s1028_s9 = smul.f32 0.00390625, %s1265_s0 }
 0x393   :  { %v1049_v19 = vpop.xlane.xlu0 %1048 }
 0x394   :  { %v1050_v20 = vrot.slane %v1049_v19, 4 }
 0x396   :  { %v1051_v21 = vadd.f32 %v1050_v20, %v1049_v19 }
 0x398   :  { %v1052_v22 = vrot.slane %v1051_v21, 2 }
 0x39a   :  { %v1053_v23 = vadd.f32 %v1052_v22, %v1051_v21 }
 0x39c   :  { %v1054_v24 = vrot.slane %v1053_v23, 1 }
 0x39e   :  { %v1055_v25 = vadd.f32 %v1054_v24, %v1053_v23 }
 0x3a0   :  { %1266 = vpush %v1055_v25 }
 0x3d1   :  { %s1267_s6 = spop %1266 }
 0x3d2   :  { %s1057_s3 = smul.f32 0.5, %s1267_s6 }
 0x3d4   :  { %s1058_s5 = sadd.f32 %s1057_s3, %s1028_s9 }
 0x3d6   :  { %v1059_v26 = vstv %s1058_s5 }
 0x3d7   :  { %1061 = vst.msk [vmem:[#allocation8] sm:$0x1] %vm1060_vm4, %v1059_v26 }
 0x3d8   :  { %1442 = shalt.err (!%p1439_p0)
}
 0x3d9   :  { %s1443_s16 = scalar_lea.hbm %s2197_s12, 16 }
 0x3da   :  { %p1444_p1 = scmp.ne.s32.totalorder %s2197_s12, %s1443_s16  ;;  %p1447_p2 = scmp.lt.u32.totalorder %s1443_s16, %s2197_s12 }
 0x3dc   :  { %p1449_p3 = pnand %p1447_p2, %p1444_p1 }
 0x3de   :  { %1452 = shalt.err (!%p1449_p3)
}
 0x3df   :  { %1071 = dma.vmem_to_hbm [thread:$0]  %s1069_s4, 16, %s2197_s12, [#allocation4]  }
 0x3e0   :  { %1457 = dma.done.wait [#allocation4], 16  }
 0x3e1   :  { %1458 = vsyncadd [#allocation4], 4294967280 }
 0x3e2   :  { %1075 = vsyncpa [#allocation4], 1 }
 0x3e3   :  { %1076 = vsyncpa [#allocation5], 1 }
 0x3e4   :  { %1077 = vsyncpa [#allocation7], 1 }

</bundles_post_ra>
